<compile_context>
chip_gen: v7x
topology: tpu7x:2x2x1
jax: 0.10.0
libtpu: 0.0.40
codegen_flags: <defaults>
</compile_context>

<pallas_src>
import functools

import jax
import jax.numpy as jnp
from jax import lax
from jax.experimental import pallas as pl
from jax.experimental.pallas import tpu as pltpu


def _dc_block_kernel(x_ref, w1_ref, w2_ref, w3_ref, bias_ref, mask_ref,
                     o_ref, flat_ref, patch_ref, *, H, W, P, D, Nb):
    """Nb batch images per grid step, channel-major (C, spatial-on-lanes) layout.

    x_ref    : (Nb, Cin, HW)  f32   Cin == 4*P, HW = H*W on the lane axis
    w1_ref   : (P, Cin)       bf16  conv1 weight, BN1 scale folded in
    w2_ref   : (P, 9P)        bf16  conv2 weight (im2col layout: row block = tap)
    w3_ref   : (4P, P)        bf16  conv3 weight, BN3 scale folded in
    bias_ref : (6P, 1)        f32   [b1 (P) | b2 (P) | b3 (4P)] folded BN biases
    mask_ref : (6, HW)        bf16  {0,1} masks for the 6 taps with dw != 0
    o_ref    : (Nb, 4P, HW)   f32
    flat_ref : (P, Nb*(HW+2*PAD)) bf16  h1 with PAD lanes of zero slack per image
    patch_ref: (9P, Nb*HW)        bf16  im2col matrix for the dilated conv
    """
    HW = H * W
    PAD = D * W + D              # max |flattened shift| of a 3x3 dilated tap
    S = HW + 2 * PAD             # per-image segment length in flat_ref

    b1 = bias_ref[pl.ds(0, P), :]
    b2 = bias_ref[pl.ds(P, P), :]
    b3 = bias_ref[pl.ds(2 * P, 4 * P), :]

    # Zero-fill the flat scratch (a few splat stores) so the vertical taps and the
    # out-of-image rows of the diagonal taps read exact zeros from the PAD strips.
    flat_ref[...] = jnp.zeros_like(flat_ref)

    # ---- conv1 (1x1) + bias + ReLU, per image: (P, Cin) @ (Cin, HW) ------------
    for i in range(Nb):
        x_bf = x_ref[i].astype(jnp.bfloat16)                          # (Cin, HW)
        h1 = jnp.dot(w1_ref[...], x_bf, preferred_element_type=jnp.float32)
        h1 = jnp.maximum(h1 + b1, 0.0).astype(jnp.bfloat16)           # (P, HW)
        flat_ref[:, pl.ds(i * S + PAD, HW)] = h1
        # Centre tap (kh=1, kw=1) of the im2col matrix is exactly h1 — write it now.
        patch_ref[pl.ds(4 * P, P), pl.ds(i * HW, HW)] = h1

    # ---- build the im2col patch for conv2 (3x3, dilation=D, padding=D) --------
    masks = mask_ref[...]                                             # (6, HW)
    m = 0
    for kh in range(3):
        for kw in range(3):
            if kh == 1 and kw == 1:
                continue                                              # centre done
            t = kh * 3 + kw
            delta = (kh - 1) * D * W + (kw - 1) * D
            for i in range(Nb):
                src = flat_ref[:, pl.ds(i * S + PAD + delta, HW)]     # (P, HW) bf16
                if kw != 1:   # horizontal shift wraps rows -> multiplicative mask
                    src = src * masks[m:m + 1, :]
                patch_ref[pl.ds(t * P, P), pl.ds(i * HW, HW)] = src
            if kw != 1:
                m += 1

    # ---- conv2 as ONE matmul: (P, 9P) @ (9P, Nb*HW), + bias + ReLU -------------
    h2 = jnp.dot(w2_ref[...], patch_ref[...], preferred_element_type=jnp.float32)
    h2 = jnp.maximum(h2 + b2, 0.0)

    # ---- conv3 (1x1) + bias: (4P, P) @ (P, Nb*HW) -------------------------------
    h3 = jnp.dot(w3_ref[...], h2.astype(jnp.bfloat16),
                 preferred_element_type=jnp.float32)                  # (4P, Nb*HW)
    h3 = h3 + b3

    # ---- residual add (kept in f32) + ReLU, per image ---------------------------
    for i in range(Nb):
        o_ref[i] = jnp.maximum(h3[:, i * HW:(i + 1) * HW] + x_ref[i],
                               0.0).astype(o_ref.dtype)


def dc_block_forward(x_nchw, kp, dilation, batch_block=None):
    """Pallas DC_Block forward. x_nchw: (N, Cin, H, W) with Cin == 4*planes."""
    N, Cin, H, W = x_nchw.shape
    P = kp["w1t"].shape[0]
    assert Cin == 4 * P, "residual add requires inplanes == 4 * planes"
    assert P % 8 == 0   # P % 16 == 0 keeps the bf16 patch stores sublane-aligned
    D = int(dilation)
    assert D < W and D < H, "flat-shift im2col assumes dilation < H, W"
    HW = H * W

    if batch_block is None:
        # Pack images per step to amortize per-step overhead, but keep >= 2 grid
        # steps so v7x's two TensorCores both get work along the parallel axis.
        batch_block = max(1, N // 2)
    Nb = batch_block
    assert N % Nb == 0, "batch must be divisible by the per-step batch block"

    PAD = D * W + D
    x = x_nchw.reshape(N, Cin, HW)           # free reshape, no transpose

    kernel = functools.partial(_dc_block_kernel, H=H, W=W, P=P, D=D, Nb=Nb)

    out = pl.pallas_call(
        kernel,
        out_shape=jax.ShapeDtypeStruct((N, 4 * P, HW), x.dtype),
        grid_spec=pltpu.PrefetchScalarGridSpec(
            num_scalar_prefetch=0,
            grid=(N // Nb,),
            in_specs=[
                pl.BlockSpec((Nb, Cin, HW), lambda n: (n, 0, 0)),
                pl.BlockSpec((P, Cin), lambda n: (0, 0)),
                pl.BlockSpec((P, 9 * P), lambda n: (0, 0)),
                pl.BlockSpec((4 * P, P), lambda n: (0, 0)),
                pl.BlockSpec((6 * P, 1), lambda n: (0, 0)),
                pl.BlockSpec((6, HW), lambda n: (0, 0)),
            ],
            out_specs=pl.BlockSpec((Nb, 4 * P, HW), lambda n: (n, 0, 0)),
            scratch_shapes=[
                pltpu.VMEM((P, Nb * (HW + 2 * PAD)), jnp.bfloat16),
                pltpu.VMEM((9 * P, Nb * HW), jnp.bfloat16),
            ],
        ),
        compiler_params=pltpu.CompilerParams(
            dimension_semantics=("parallel",),
            vmem_limit_bytes=32 * 1024 * 1024,
        ),
    )(x, kp["w1t"], kp["w2m"], kp["w3t"], kp["bias"], kp["masks"])

    return out.reshape(N, 4 * P, H, W)       # free reshape, no transpose


def make_params(key, inplanes, planes, dilation, H, W, eps=1e-5):
    """Synthetic parameters with inference BatchNorm folded into weights/biases."""
    P = planes
    D = int(dilation)
    ks = jax.random.split(key, 15)

    def fold_bn(kg, kb, km, kv, c):
        gamma = 1.0 + 0.1 * jax.random.normal(kg, (c,), jnp.float32)
        beta = 0.1 * jax.random.normal(kb, (c,), jnp.float32)
        mean = 0.1 * jax.random.normal(km, (c,), jnp.float32)
        var = jax.random.uniform(kv, (c,), jnp.float32, 0.5, 1.5)
        scale = gamma / jnp.sqrt(var + eps)
        bias = beta - mean * scale
        return scale, bias

    # PyTorch-layout conv weights: (out, in) / (out, in, kh, kw)
    w1 = 0.1 * jax.random.normal(ks[0], (P, inplanes), jnp.float32)
    w2 = 0.1 * jax.random.normal(ks[1], (P, P, 3, 3), jnp.float32)
    w3 = 0.1 * jax.random.normal(ks[2], (4 * P, P), jnp.float32)
    s1, b1 = fold_bn(ks[3], ks[4], ks[5], ks[6], P)
    s2, b2 = fold_bn(ks[7], ks[8], ks[9], ks[10], P)
    s3, b3 = fold_bn(ks[11], ks[12], ks[13], ks[14], 4 * P)

    kp = {}
    # BN scale folded per output channel, then cast to bf16 for the MXU.
    kp["w1t"] = (w1 * s1[:, None]).astype(jnp.bfloat16)                # (P, Cin)
    w2m = jnp.transpose(w2, (0, 2, 3, 1)).reshape(P, 9 * P)            # col = (kh*3+kw)*P + c
    kp["w2m"] = (w2m * s2[:, None]).astype(jnp.bfloat16)               # (P, 9P)
    kp["w3t"] = (w3 * s3[:, None]).astype(jnp.bfloat16)                # (4P, P)
    kp["bias"] = jnp.concatenate([b1, b2, b3]).reshape(6 * P, 1)       # (6P, 1) f32

    # bf16 {0,1} masks for the 6 taps with a horizontal offset (kw != 1); the
    # vertical taps need no mask because the flat scratch's PAD strips are zero.
    hh = jnp.arange(H * W) // W
    ww = jnp.arange(H * W) % W
    masks = []
    for kh in range(3):
        for kw in range(3):
            if kw == 1:
                continue
            dh, dw = (kh - 1) * D, (kw - 1) * D
            masks.append((hh + dh >= 0) & (hh + dh < H) &
                         (ww + dw >= 0) & (ww + dw < W))
    kp["masks"] = jnp.stack(masks).astype(jnp.bfloat16)                # (6, HW)
    return kp


def ref_forward(x_nchw, kp, dilation):
    """Pure-JAX reference (lax.conv, NHWC) using the same folded bf16 weights."""
    D = int(dilation)
    P = kp["w1t"].shape[0]
    b1 = kp["bias"][:P, 0]
    b2 = kp["bias"][P:2 * P, 0]
    b3 = kp["bias"][2 * P:, 0]
    dn = ("NHWC", "HWIO", "NHWC")
    x = jnp.transpose(x_nchw, (0, 2, 3, 1))                            # NHWC, f32

    w1_hwio = kp["w1t"].T[None, None]                                  # (1,1,Cin,P)
    w2_hwio = jnp.transpose(kp["w2m"].reshape(P, 3, 3, P), (1, 2, 3, 0))  # (3,3,P,P)
    w3_hwio = kp["w3t"].T[None, None]                                  # (1,1,P,4P)

    h = lax.conv_general_dilated(x.astype(jnp.bfloat16), w1_hwio, (1, 1),
                                 [(0, 0), (0, 0)], dimension_numbers=dn,
                                 preferred_element_type=jnp.float32)
    h = jnp.maximum(h + b1, 0.0)

    h = lax.conv_general_dilated(h.astype(jnp.bfloat16), w2_hwio, (1, 1),
                                 [(D, D), (D, D)], rhs_dilation=(D, D),
                                 dimension_numbers=dn,
                                 preferred_element_type=jnp.float32)
    h = jnp.maximum(h + b2, 0.0)

    h = lax.conv_general_dilated(h.astype(jnp.bfloat16), w3_hwio, (1, 1),
                                 [(0, 0), (0, 0)], dimension_numbers=dn,
                                 preferred_element_type=jnp.float32)
    h = h + b3

    out = jnp.maximum(h + x, 0.0)
    return jnp.transpose(out, (0, 3, 1, 2))


if __name__ == "__main__":
    # planes is a multiple of 16 so the bf16 im2col scratch stores stay sublane-
    # aligned; inplanes = 4*planes so the residual add is valid (as in the real
    # network); stride=1, dilation=2. N=4 so the packed grid (Nb=2 images/step)
    # still has 2 parallel steps for v7x's two TensorCores.
    planes = 16
    inplanes = 4 * planes          # 64
    N, H, W = 4, 16, 16
    dilation = 2

    key = jax.random.PRNGKey(0)
    kx, kparam = jax.random.split(key)
    x = jax.random.normal(kx, (N, inplanes, H, W), jnp.float32)
    kp = make_params(kparam, inplanes, planes, dilation, H, W)

    out = jax.block_until_ready(dc_block_forward(x, kp, dilation))
    ref = jax.block_until_ready(ref_forward(x, kp, dilation))

    assert out.shape == (N, 4 * planes, H, W)
    max_err = float(jnp.max(jnp.abs(out - ref)))
    assert jnp.allclose(out, ref, rtol=1e-3, atol=1e-3), max_err

    print("KERNEL_OK")
</pallas_src>

<mosaic_0001>
module attributes {stable_mosaic.version = 11 : i64} {
  func.func @_dc_block_kernel(%arg0: i32, %arg1: memref<2x64x256xf32, #tpu.memory_space<vmem>>, %arg2: memref<16x64xbf16, #tpu.memory_space<vmem>>, %arg3: memref<16x144xbf16, #tpu.memory_space<vmem>>, %arg4: memref<64x16xbf16, #tpu.memory_space<vmem>>, %arg5: memref<96x1xf32, #tpu.memory_space<vmem>>, %arg6: memref<6x256xbf16, #tpu.memory_space<vmem>>, %arg7: memref<2x64x256xf32, #tpu.memory_space<vmem>>, %arg8: memref<16x648xbf16, #tpu.memory_space<vmem>>, %arg9: memref<144x512xbf16, #tpu.memory_space<vmem>>) attributes {dimension_semantics = [#tpu.dimension_semantics<parallel>], iteration_bounds = array<i64: 2>, scalar_prefetch = 0 : i64, scratch_operands = 2 : i64, tpu.core_type = #tpu.core_type<tc>, window_params = [{transform_indices = @transform_0, window_bounds = array<i64: 2, 64, 256>}, {pipeline_mode = #tpu.pipeline_mode<synchronous>, transform_indices = @transform_1, window_bounds = array<i64: 16, 64>}, {pipeline_mode = #tpu.pipeline_mode<synchronous>, transform_indices = @transform_2, window_bounds = array<i64: 16, 144>}, {pipeline_mode = #tpu.pipeline_mode<synchronous>, transform_indices = @transform_3, window_bounds = array<i64: 64, 16>}, {pipeline_mode = #tpu.pipeline_mode<synchronous>, transform_indices = @transform_4, window_bounds = array<i64: 96, 1>}, {pipeline_mode = #tpu.pipeline_mode<synchronous>, transform_indices = @transform_5, window_bounds = array<i64: 6, 256>}, {transform_indices = @transform_6, window_bounds = array<i64: 2, 64, 256>}]} {
    %c0 = arith.constant 0 : index
    %c0_0 = arith.constant 0 : index
    %0 = vector.load %arg5[%c0, %c0_0] : memref<96x1xf32, #tpu.memory_space<vmem>>, vector<16x1xf32>
    %c16 = arith.constant 16 : index
    %c0_1 = arith.constant 0 : index
    %1 = vector.load %arg5[%c16, %c0_1] : memref<96x1xf32, #tpu.memory_space<vmem>>, vector<16x1xf32>
    %c32 = arith.constant 32 : index
    %c0_2 = arith.constant 0 : index
    %2 = vector.load %arg5[%c32, %c0_2] : memref<96x1xf32, #tpu.memory_space<vmem>>, vector<64x1xf32>
    %cst = arith.constant 0.000000e+00 : bf16
    %3 = vector.broadcast %cst : bf16 to vector<16x648xbf16>
    %c0_3 = arith.constant 0 : index
    %c0_4 = arith.constant 0 : index
    %4 = vector.load %arg8[%c0_3, %c0_4] : memref<16x648xbf16, #tpu.memory_space<vmem>>, vector<16x648xbf16>
    tpu.vector_store %arg8[%c0_3, %c0_4], %3 {strides = array<i32>} : memref<16x648xbf16, #tpu.memory_space<vmem>>, vector<16x648xbf16>,
    %c0_5 = arith.constant 0 : index
    %c0_6 = arith.constant 0 : index
    %c0_7 = arith.constant 0 : index
    %5 = vector.load %arg1[%c0_5, %c0_6, %c0_7] : memref<2x64x256xf32, #tpu.memory_space<vmem>>, vector<1x64x256xf32>
    %6 = vector.shape_cast %5 : vector<1x64x256xf32> to vector<64x256xf32>
    %7 = arith.truncf %6 : vector<64x256xf32> to vector<64x256xbf16>
    %c0_8 = arith.constant 0 : index
    %c0_9 = arith.constant 0 : index
    %8 = vector.load %arg2[%c0_8, %c0_9] : memref<16x64xbf16, #tpu.memory_space<vmem>>, vector<16x64xbf16>
    %cst_10 = arith.constant dense<0.000000e+00> : vector<16x256xf32>
    %9 = tpu.matmul %8, %7, %cst_10 {dimension_numbers = #tpu.dot_dimension_numbers<[1], [0], [0], [1], [0, 0, 1, 1], [], []>} : vector<16x64xbf16>, vector<64x256xbf16>, vector<16x256xf32> -> vector<16x256xf32>
    %10 = vector.broadcast %0 : vector<16x1xf32> to vector<16x256xf32>
    %11 = arith.addf %9, %10 : vector<16x256xf32>
    %cst_11 = arith.constant 0.000000e+00 : f32
    %12 = vector.broadcast %cst_11 : f32 to vector<16x256xf32>
    %13 = arith.maximumf %11, %12 : vector<16x256xf32>
    %14 = arith.truncf %13 : vector<16x256xf32> to vector<16x256xbf16>
    %c0_12 = arith.constant 0 : index
    %c34 = arith.constant 34 : index
    %15 = vector.load %arg8[%c0_12, %c34] : memref<16x648xbf16, #tpu.memory_space<vmem>>, vector<16x256xbf16>
    tpu.vector_store %arg8[%c0_12, %c34], %14 {strides = array<i32>} : memref<16x648xbf16, #tpu.memory_space<vmem>>, vector<16x256xbf16>,
    %c64 = arith.constant 64 : index
    %c0_13 = arith.constant 0 : index
    %16 = vector.load %arg9[%c64, %c0_13] : memref<144x512xbf16, #tpu.memory_space<vmem>>, vector<16x256xbf16>
    tpu.vector_store %arg9[%c64, %c0_13], %14 {strides = array<i32>} : memref<144x512xbf16, #tpu.memory_space<vmem>>, vector<16x256xbf16>,
    %c1 = arith.constant 1 : index
    %c0_14 = arith.constant 0 : index
    %c0_15 = arith.constant 0 : index
    %17 = vector.load %arg1[%c1, %c0_14, %c0_15] : memref<2x64x256xf32, #tpu.memory_space<vmem>>, vector<1x64x256xf32>
    %18 = vector.shape_cast %17 : vector<1x64x256xf32> to vector<64x256xf32>
    %19 = arith.truncf %18 : vector<64x256xf32> to vector<64x256xbf16>
    %c0_16 = arith.constant 0 : index
    %c0_17 = arith.constant 0 : index
    %20 = vector.load %arg2[%c0_16, %c0_17] : memref<16x64xbf16, #tpu.memory_space<vmem>>, vector<16x64xbf16>
    %cst_18 = arith.constant dense<0.000000e+00> : vector<16x256xf32>
    %21 = tpu.matmul %20, %19, %cst_18 {dimension_numbers = #tpu.dot_dimension_numbers<[1], [0], [0], [1], [0, 0, 1, 1], [], []>} : vector<16x64xbf16>, vector<64x256xbf16>, vector<16x256xf32> -> vector<16x256xf32>
    %22 = vector.broadcast %0 : vector<16x1xf32> to vector<16x256xf32>
    %23 = arith.addf %21, %22 : vector<16x256xf32>
    %cst_19 = arith.constant 0.000000e+00 : f32
    %24 = vector.broadcast %cst_19 : f32 to vector<16x256xf32>
    %25 = arith.maximumf %23, %24 : vector<16x256xf32>
    %26 = arith.truncf %25 : vector<16x256xf32> to vector<16x256xbf16>
    %c0_20 = arith.constant 0 : index
    %c358 = arith.constant 358 : index
    %27 = vector.load %arg8[%c0_20, %c358] : memref<16x648xbf16, #tpu.memory_space<vmem>>, vector<16x256xbf16>
    tpu.vector_store %arg8[%c0_20, %c358], %26 {strides = array<i32>} : memref<16x648xbf16, #tpu.memory_space<vmem>>, vector<16x256xbf16>,
    %c64_21 = arith.constant 64 : index
    %c256 = arith.constant 256 : index
    %28 = vector.load %arg9[%c64_21, %c256] : memref<144x512xbf16, #tpu.memory_space<vmem>>, vector<16x256xbf16>
    tpu.vector_store %arg9[%c64_21, %c256], %26 {strides = array<i32>} : memref<144x512xbf16, #tpu.memory_space<vmem>>, vector<16x256xbf16>,
    %c0_22 = arith.constant 0 : index
    %c0_23 = arith.constant 0 : index
    %29 = vector.load %arg6[%c0_22, %c0_23] : memref<6x256xbf16, #tpu.memory_space<vmem>>, vector<6x256xbf16>
    %c0_24 = arith.constant 0 : index
    %c0_25 = arith.constant 0 : index
    %30 = vector.load %arg8[%c0_24, %c0_25] : memref<16x648xbf16, #tpu.memory_space<vmem>>, vector<16x256xbf16>
    %31 = vector.extract_strided_slice %29 {offsets = [0, 0], sizes = [1, 256], strides = [1, 1]} : vector<6x256xbf16> to vector<1x256xbf16>
    %32 = vector.broadcast %31 : vector<1x256xbf16> to vector<16x256xbf16>
    %33 = arith.mulf %30, %32 : vector<16x256xbf16>
    %c0_26 = arith.constant 0 : index
    %c0_27 = arith.constant 0 : index
    %34 = vector.load %arg9[%c0_26, %c0_27] : memref<144x512xbf16, #tpu.memory_space<vmem>>, vector<16x256xbf16>
    tpu.vector_store %arg9[%c0_26, %c0_27], %33 {strides = array<i32>} : memref<144x512xbf16, #tpu.memory_space<vmem>>, vector<16x256xbf16>,
    %c0_28 = arith.constant 0 : index
    %c324 = arith.constant 324 : index
    %35 = vector.load %arg8[%c0_28, %c324] : memref<16x648xbf16, #tpu.memory_space<vmem>>, vector<16x256xbf16>
    %36 = vector.extract_strided_slice %29 {offsets = [0, 0], sizes = [1, 256], strides = [1, 1]} : vector<6x256xbf16> to vector<1x256xbf16>
    %37 = vector.broadcast %36 : vector<1x256xbf16> to vector<16x256xbf16>
    %38 = arith.mulf %35, %37 : vector<16x256xbf16>
    %c0_29 = arith.constant 0 : index
    %c256_30 = arith.constant 256 : index
    %39 = vector.load %arg9[%c0_29, %c256_30] : memref<144x512xbf16, #tpu.memory_space<vmem>>, vector<16x256xbf16>
    tpu.vector_store %arg9[%c0_29, %c256_30], %38 {strides = array<i32>} : memref<144x512xbf16, #tpu.memory_space<vmem>>, vector<16x256xbf16>,
    %c0_31 = arith.constant 0 : index
    %c2 = arith.constant 2 : index
    %40 = vector.load %arg8[%c0_31, %c2] : memref<16x648xbf16, #tpu.memory_space<vmem>>, vector<16x256xbf16>
    %c16_32 = arith.constant 16 : index
    %c0_33 = arith.constant 0 : index
    %41 = vector.load %arg9[%c16_32, %c0_33] : memref<144x512xbf16, #tpu.memory_space<vmem>>, vector<16x256xbf16>
    tpu.vector_store %arg9[%c16_32, %c0_33], %40 {strides = array<i32>} : memref<144x512xbf16, #tpu.memory_space<vmem>>, vector<16x256xbf16>,
    %c0_34 = arith.constant 0 : index
    %c326 = arith.constant 326 : index
    %42 = vector.load %arg8[%c0_34, %c326] : memref<16x648xbf16, #tpu.memory_space<vmem>>, vector<16x256xbf16>
    %c16_35 = arith.constant 16 : index
    %c256_36 = arith.constant 256 : index
    %43 = vector.load %arg9[%c16_35, %c256_36] : memref<144x512xbf16, #tpu.memory_space<vmem>>, vector<16x256xbf16>
    tpu.vector_store %arg9[%c16_35, %c256_36], %42 {strides = array<i32>} : memref<144x512xbf16, #tpu.memory_space<vmem>>, vector<16x256xbf16>,
    %c0_37 = arith.constant 0 : index
    %c4 = arith.constant 4 : index
    %44 = vector.load %arg8[%c0_37, %c4] : memref<16x648xbf16, #tpu.memory_space<vmem>>, vector<16x256xbf16>
    %45 = vector.extract_strided_slice %29 {offsets = [1, 0], sizes = [1, 256], strides = [1, 1]} : vector<6x256xbf16> to vector<1x256xbf16>
    %46 = vector.broadcast %45 : vector<1x256xbf16> to vector<16x256xbf16>
    %47 = arith.mulf %44, %46 : vector<16x256xbf16>
    %c32_38 = arith.constant 32 : index
    %c0_39 = arith.constant 0 : index
    %48 = vector.load %arg9[%c32_38, %c0_39] : memref<144x512xbf16, #tpu.memory_space<vmem>>, vector<16x256xbf16>
    tpu.vector_store %arg9[%c32_38, %c0_39], %47 {strides = array<i32>} : memref<144x512xbf16, #tpu.memory_space<vmem>>, vector<16x256xbf16>,
    %c0_40 = arith.constant 0 : index
    %c328 = arith.constant 328 : index
    %49 = vector.load %arg8[%c0_40, %c328] : memref<16x648xbf16, #tpu.memory_space<vmem>>, vector<16x256xbf16>
    %50 = vector.extract_strided_slice %29 {offsets = [1, 0], sizes = [1, 256], strides = [1, 1]} : vector<6x256xbf16> to vector<1x256xbf16>
    %51 = vector.broadcast %50 : vector<1x256xbf16> to vector<16x256xbf16>
    %52 = arith.mulf %49, %51 : vector<16x256xbf16>
    %c32_41 = arith.constant 32 : index
    %c256_42 = arith.constant 256 : index
    %53 = vector.load %arg9[%c32_41, %c256_42] : memref<144x512xbf16, #tpu.memory_space<vmem>>, vector<16x256xbf16>
    tpu.vector_store %arg9[%c32_41, %c256_42], %52 {strides = array<i32>} : memref<144x512xbf16, #tpu.memory_space<vmem>>, vector<16x256xbf16>,
    %c0_43 = arith.constant 0 : index
    %c32_44 = arith.constant 32 : index
    %54 = vector.load %arg8[%c0_43, %c32_44] : memref<16x648xbf16, #tpu.memory_space<vmem>>, vector<16x256xbf16>
    %55 = vector.extract_strided_slice %29 {offsets = [2, 0], sizes = [1, 256], strides = [1, 1]} : vector<6x256xbf16> to vector<1x256xbf16>
    %56 = vector.broadcast %55 : vector<1x256xbf16> to vector<16x256xbf16>
    %57 = arith.mulf %54, %56 : vector<16x256xbf16>
    %c48 = arith.constant 48 : index
    %c0_45 = arith.constant 0 : index
    %58 = vector.load %arg9[%c48, %c0_45] : memref<144x512xbf16, #tpu.memory_space<vmem>>, vector<16x256xbf16>
    tpu.vector_store %arg9[%c48, %c0_45], %57 {strides = array<i32>} : memref<144x512xbf16, #tpu.memory_space<vmem>>, vector<16x256xbf16>,
    %c0_46 = arith.constant 0 : index
    %c356 = arith.constant 356 : index
    %59 = vector.load %arg8[%c0_46, %c356] : memref<16x648xbf16, #tpu.memory_space<vmem>>, vector<16x256xbf16>
    %60 = vector.extract_strided_slice %29 {offsets = [2, 0], sizes = [1, 256], strides = [1, 1]} : vector<6x256xbf16> to vector<1x256xbf16>
    %61 = vector.broadcast %60 : vector<1x256xbf16> to vector<16x256xbf16>
    %62 = arith.mulf %59, %61 : vector<16x256xbf16>
    %c48_47 = arith.constant 48 : index
    %c256_48 = arith.constant 256 : index
    %63 = vector.load %arg9[%c48_47, %c256_48] : memref<144x512xbf16, #tpu.memory_space<vmem>>, vector<16x256xbf16>
    tpu.vector_store %arg9[%c48_47, %c256_48], %62 {strides = array<i32>} : memref<144x512xbf16, #tpu.memory_space<vmem>>, vector<16x256xbf16>,
    %c0_49 = arith.constant 0 : index
    %c36 = arith.constant 36 : index
    %64 = vector.load %arg8[%c0_49, %c36] : memref<16x648xbf16, #tpu.memory_space<vmem>>, vector<16x256xbf16>
    %65 = vector.extract_strided_slice %29 {offsets = [3, 0], sizes = [1, 256], strides = [1, 1]} : vector<6x256xbf16> to vector<1x256xbf16>
    %66 = vector.broadcast %65 : vector<1x256xbf16> to vector<16x256xbf16>
    %67 = arith.mulf %64, %66 : vector<16x256xbf16>
    %c80 = arith.constant 80 : index
    %c0_50 = arith.constant 0 : index
    %68 = vector.load %arg9[%c80, %c0_50] : memref<144x512xbf16, #tpu.memory_space<vmem>>, vector<16x256xbf16>
    tpu.vector_store %arg9[%c80, %c0_50], %67 {strides = array<i32>} : memref<144x512xbf16, #tpu.memory_space<vmem>>, vector<16x256xbf16>,
    %c0_51 = arith.constant 0 : index
    %c360 = arith.constant 360 : index
    %69 = vector.load %arg8[%c0_51, %c360] : memref<16x648xbf16, #tpu.memory_space<vmem>>, vector<16x256xbf16>
    %70 = vector.extract_strided_slice %29 {offsets = [3, 0], sizes = [1, 256], strides = [1, 1]} : vector<6x256xbf16> to vector<1x256xbf16>
    %71 = vector.broadcast %70 : vector<1x256xbf16> to vector<16x256xbf16>
    %72 = arith.mulf %69, %71 : vector<16x256xbf16>
    %c80_52 = arith.constant 80 : index
    %c256_53 = arith.constant 256 : index
    %73 = vector.load %arg9[%c80_52, %c256_53] : memref<144x512xbf16, #tpu.memory_space<vmem>>, vector<16x256xbf16>
    tpu.vector_store %arg9[%c80_52, %c256_53], %72 {strides = array<i32>} : memref<144x512xbf16, #tpu.memory_space<vmem>>, vector<16x256xbf16>,
    %c0_54 = arith.constant 0 : index
    %c64_55 = arith.constant 64 : index
    %74 = vector.load %arg8[%c0_54, %c64_55] : memref<16x648xbf16, #tpu.memory_space<vmem>>, vector<16x256xbf16>
    %75 = vector.extract_strided_slice %29 {offsets = [4, 0], sizes = [1, 256], strides = [1, 1]} : vector<6x256xbf16> to vector<1x256xbf16>
    %76 = vector.broadcast %75 : vector<1x256xbf16> to vector<16x256xbf16>
    %77 = arith.mulf %74, %76 : vector<16x256xbf16>
    %c96 = arith.constant 96 : index
    %c0_56 = arith.constant 0 : index
    %78 = vector.load %arg9[%c96, %c0_56] : memref<144x512xbf16, #tpu.memory_space<vmem>>, vector<16x256xbf16>
    tpu.vector_store %arg9[%c96, %c0_56], %77 {strides = array<i32>} : memref<144x512xbf16, #tpu.memory_space<vmem>>, vector<16x256xbf16>,
    %c0_57 = arith.constant 0 : index
    %c388 = arith.constant 388 : index
    %79 = vector.load %arg8[%c0_57, %c388] : memref<16x648xbf16, #tpu.memory_space<vmem>>, vector<16x256xbf16>
    %80 = vector.extract_strided_slice %29 {offsets = [4, 0], sizes = [1, 256], strides = [1, 1]} : vector<6x256xbf16> to vector<1x256xbf16>
    %81 = vector.broadcast %80 : vector<1x256xbf16> to vector<16x256xbf16>
    %82 = arith.mulf %79, %81 : vector<16x256xbf16>
    %c96_58 = arith.constant 96 : index
    %c256_59 = arith.constant 256 : index
    %83 = vector.load %arg9[%c96_58, %c256_59] : memref<144x512xbf16, #tpu.memory_space<vmem>>, vector<16x256xbf16>
    tpu.vector_store %arg9[%c96_58, %c256_59], %82 {strides = array<i32>} : memref<144x512xbf16, #tpu.memory_space<vmem>>, vector<16x256xbf16>,
    %c0_60 = arith.constant 0 : index
    %c66 = arith.constant 66 : index
    %84 = vector.load %arg8[%c0_60, %c66] : memref<16x648xbf16, #tpu.memory_space<vmem>>, vector<16x256xbf16>
    %c112 = arith.constant 112 : index
    %c0_61 = arith.constant 0 : index
    %85 = vector.load %arg9[%c112, %c0_61] : memref<144x512xbf16, #tpu.memory_space<vmem>>, vector<16x256xbf16>
    tpu.vector_store %arg9[%c112, %c0_61], %84 {strides = array<i32>} : memref<144x512xbf16, #tpu.memory_space<vmem>>, vector<16x256xbf16>,
    %c0_62 = arith.constant 0 : index
    %c390 = arith.constant 390 : index
    %86 = vector.load %arg8[%c0_62, %c390] : memref<16x648xbf16, #tpu.memory_space<vmem>>, vector<16x256xbf16>
    %c112_63 = arith.constant 112 : index
    %c256_64 = arith.constant 256 : index
    %87 = vector.load %arg9[%c112_63, %c256_64] : memref<144x512xbf16, #tpu.memory_space<vmem>>, vector<16x256xbf16>
    tpu.vector_store %arg9[%c112_63, %c256_64], %86 {strides = array<i32>} : memref<144x512xbf16, #tpu.memory_space<vmem>>, vector<16x256xbf16>,
    %c0_65 = arith.constant 0 : index
    %c68 = arith.constant 68 : index
    %88 = vector.load %arg8[%c0_65, %c68] : memref<16x648xbf16, #tpu.memory_space<vmem>>, vector<16x256xbf16>
    %89 = vector.extract_strided_slice %29 {offsets = [5, 0], sizes = [1, 256], strides = [1, 1]} : vector<6x256xbf16> to vector<1x256xbf16>
    %90 = vector.broadcast %89 : vector<1x256xbf16> to vector<16x256xbf16>
    %91 = arith.mulf %88, %90 : vector<16x256xbf16>
    %c128 = arith.constant 128 : index
    %c0_66 = arith.constant 0 : index
    %92 = vector.load %arg9[%c128, %c0_66] : memref<144x512xbf16, #tpu.memory_space<vmem>>, vector<16x256xbf16>
    tpu.vector_store %arg9[%c128, %c0_66], %91 {strides = array<i32>} : memref<144x512xbf16, #tpu.memory_space<vmem>>, vector<16x256xbf16>,
    %c0_67 = arith.constant 0 : index
    %c392 = arith.constant 392 : index
    %93 = vector.load %arg8[%c0_67, %c392] : memref<16x648xbf16, #tpu.memory_space<vmem>>, vector<16x256xbf16>
    %94 = vector.extract_strided_slice %29 {offsets = [5, 0], sizes = [1, 256], strides = [1, 1]} : vector<6x256xbf16> to vector<1x256xbf16>
    %95 = vector.broadcast %94 : vector<1x256xbf16> to vector<16x256xbf16>
    %96 = arith.mulf %93, %95 : vector<16x256xbf16>
    %c128_68 = arith.constant 128 : index
    %c256_69 = arith.constant 256 : index
    %97 = vector.load %arg9[%c128_68, %c256_69] : memref<144x512xbf16, #tpu.memory_space<vmem>>, vector<16x256xbf16>
    tpu.vector_store %arg9[%c128_68, %c256_69], %96 {strides = array<i32>} : memref<144x512xbf16, #tpu.memory_space<vmem>>, vector<16x256xbf16>,
    %c0_70 = arith.constant 0 : index
    %c0_71 = arith.constant 0 : index
    %98 = vector.load %arg3[%c0_70, %c0_71] : memref<16x144xbf16, #tpu.memory_space<vmem>>, vector<16x144xbf16>
    %c0_72 = arith.constant 0 : index
    %c0_73 = arith.constant 0 : index
    %99 = vector.load %arg9[%c0_72, %c0_73] : memref<144x512xbf16, #tpu.memory_space<vmem>>, vector<144x512xbf16>
    %cst_74 = arith.constant dense<0.000000e+00> : vector<16x512xf32>
    %100 = tpu.matmul %98, %99, %cst_74 {dimension_numbers = #tpu.dot_dimension_numbers<[1], [0], [0], [1], [0, 0, 1, 1], [], []>} : vector<16x144xbf16>, vector<144x512xbf16>, vector<16x512xf32> -> vector<16x512xf32>
    %101 = vector.broadcast %1 : vector<16x1xf32> to vector<16x512xf32>
    %102 = arith.addf %100, %101 : vector<16x512xf32>
    %cst_75 = arith.constant 0.000000e+00 : f32
    %103 = vector.broadcast %cst_75 : f32 to vector<16x512xf32>
    %104 = arith.maximumf %102, %103 : vector<16x512xf32>
    %c0_76 = arith.constant 0 : index
    %c0_77 = arith.constant 0 : index
    %105 = vector.load %arg4[%c0_76, %c0_77] : memref<64x16xbf16, #tpu.memory_space<vmem>>, vector<64x16xbf16>
    %106 = arith.truncf %104 : vector<16x512xf32> to vector<16x512xbf16>
    %cst_78 = arith.constant dense<0.000000e+00> : vector<64x512xf32>
    %107 = tpu.matmul %105, %106, %cst_78 {dimension_numbers = #tpu.dot_dimension_numbers<[1], [0], [0], [1], [0, 0, 1, 1], [], []>} : vector<64x16xbf16>, vector<16x512xbf16>, vector<64x512xf32> -> vector<64x512xf32>
    %108 = vector.broadcast %2 : vector<64x1xf32> to vector<64x512xf32>
    %109 = arith.addf %107, %108 : vector<64x512xf32>
    %110 = vector.extract_strided_slice %109 {offsets = [0, 0], sizes = [64, 256], strides = [1, 1]} : vector<64x512xf32> to vector<64x256xf32>
    %c0_79 = arith.constant 0 : index
    %c0_80 = arith.constant 0 : index
    %c0_81 = arith.constant 0 : index
    %111 = vector.load %arg1[%c0_79, %c0_80, %c0_81] : memref<2x64x256xf32, #tpu.memory_space<vmem>>, vector<1x64x256xf32>
    %112 = vector.shape_cast %111 : vector<1x64x256xf32> to vector<64x256xf32>
    %113 = arith.addf %110, %112 : vector<64x256xf32>
    %cst_82 = arith.constant 0.000000e+00 : f32
    %114 = vector.broadcast %cst_82 : f32 to vector<64x256xf32>
    %115 = arith.maximumf %113, %114 : vector<64x256xf32>
    %c0_83 = arith.constant 0 : index
    %c0_84 = arith.constant 0 : index
    %c0_85 = arith.constant 0 : index
    %116 = vector.load %arg7[%c0_83, %c0_84, %c0_85] : memref<2x64x256xf32, #tpu.memory_space<vmem>>, vector<1x64x256xf32>
    %117 = vector.shape_cast %116 : vector<1x64x256xf32> to vector<64x256xf32>
    %118 = vector.shape_cast %115 : vector<64x256xf32> to vector<1x64x256xf32>
    tpu.vector_store %arg7[%c0_83, %c0_84, %c0_85], %118 {strides = array<i32>} : memref<2x64x256xf32, #tpu.memory_space<vmem>>, vector<1x64x256xf32>,
    %119 = vector.extract_strided_slice %109 {offsets = [0, 256], sizes = [64, 256], strides = [1, 1]} : vector<64x512xf32> to vector<64x256xf32>
    %c1_86 = arith.constant 1 : index
    %c0_87 = arith.constant 0 : index
    %c0_88 = arith.constant 0 : index
    %120 = vector.load %arg1[%c1_86, %c0_87, %c0_88] : memref<2x64x256xf32, #tpu.memory_space<vmem>>, vector<1x64x256xf32>
    %121 = vector.shape_cast %120 : vector<1x64x256xf32> to vector<64x256xf32>
    %122 = arith.addf %119, %121 : vector<64x256xf32>
    %cst_89 = arith.constant 0.000000e+00 : f32
    %123 = vector.broadcast %cst_89 : f32 to vector<64x256xf32>
    %124 = arith.maximumf %122, %123 : vector<64x256xf32>
    %c1_90 = arith.constant 1 : index
    %c0_91 = arith.constant 0 : index
    %c0_92 = arith.constant 0 : index
    %125 = vector.load %arg7[%c1_90, %c0_91, %c0_92] : memref<2x64x256xf32, #tpu.memory_space<vmem>>, vector<1x64x256xf32>
    %126 = vector.shape_cast %125 : vector<1x64x256xf32> to vector<64x256xf32>
    %127 = vector.shape_cast %124 : vector<64x256xf32> to vector<1x64x256xf32>
    tpu.vector_store %arg7[%c1_90, %c0_91, %c0_92], %127 {strides = array<i32>} : memref<2x64x256xf32, #tpu.memory_space<vmem>>, vector<1x64x256xf32>,
    return
  }
  func.func @transform_0(%arg0: i32) -> (i32, i32, i32) {
    %c0_i32 = arith.constant 0 : i32
    %c0_i32_0 = arith.constant 0 : i32
    %c0_i32_1 = arith.constant 0 : i32
    return %arg0, %c0_i32, %c0_i32_0 : i32, i32, i32
  }
  func.func @transform_1(%arg0: i32) -> (i32, i32) {
    %c0_i32 = arith.constant 0 : i32
    %c0_i32_0 = arith.constant 0 : i32
    %c0_i32_1 = arith.constant 0 : i32
    return %c0_i32, %c0_i32_0 : i32, i32
  }
  func.func @transform_2(%arg0: i32) -> (i32, i32) {
    %c0_i32 = arith.constant 0 : i32
    %c0_i32_0 = arith.constant 0 : i32
    %c0_i32_1 = arith.constant 0 : i32
    return %c0_i32, %c0_i32_0 : i32, i32
  }
  func.func @transform_3(%arg0: i32) -> (i32, i32) {
    %c0_i32 = arith.constant 0 : i32
    %c0_i32_0 = arith.constant 0 : i32
    %c0_i32_1 = arith.constant 0 : i32
    return %c0_i32, %c0_i32_0 : i32, i32
  }
  func.func @transform_4(%arg0: i32) -> (i32, i32) {
    %c0_i32 = arith.constant 0 : i32
    %c0_i32_0 = arith.constant 0 : i32
    %c0_i32_1 = arith.constant 0 : i32
    return %c0_i32, %c0_i32_0 : i32, i32
  }
  func.func @transform_5(%arg0: i32) -> (i32, i32) {
    %c0_i32 = arith.constant 0 : i32
    %c0_i32_0 = arith.constant 0 : i32
    %c0_i32_1 = arith.constant 0 : i32
    return %c0_i32, %c0_i32_0 : i32, i32
  }
  func.func @transform_6(%arg0: i32) -> (i32, i32, i32) {
    %c0_i32 = arith.constant 0 : i32
    %c0_i32_0 = arith.constant 0 : i32
    %c0_i32_1 = arith.constant 0 : i32
    return %arg0, %c0_i32, %c0_i32_0 : i32, i32, i32
  }
}

</mosaic_0001>

<bundles_post_ra>
// kernel: tpu_custom_call.1
= control target key start
LH: loop header
LB: loop body
LE: loop exit
PB: predicated region body
PF: predicated region fallthrough
CT: control target
= control target key end

     0   :  { %11 = vsyncpa [#allocation5], 0  ;;  %s2563_s0 = inlined_call_operand.hbm [shape: f32[4,64,256], index: 0, kind: input, shape index: {}]   ;;  %s2564_s1 = inlined_call_operand.vmem [shape: bf16[16,64], index: 1, kind: input, shape index: {}]   ;;  %s2565_s2 = inlined_call_operand.vmem [shape: bf16[16,144], index: 2, kind: input, shape index: {}]   ;;  %s2566_s3 = inlined_call_operand.vmem [shape: bf16[64,16], index: 3, kind: input, shape index: {}]   ;;  %s2567_s4 = inlined_call_operand.vmem [shape: f32[96,1], index: 4, kind: input, shape index: {}]   ;;  %s2568_s5 = inlined_call_operand.vmem [shape: bf16[6,256], index: 5, kind: input, shape index: {}]   ;;  %s2569_s6 = inlined_call_operand.hbm [shape: f32[4,64,256], index: 6, kind: output, shape index: {}]  }
   0x1   :  { %13 = vsyncpa [#allocation5 + $0x1], 0 }
   0x2   :  { %14 = vsyncpa [#allocation6], 0 }
   0x3   :  { %16 = vsyncpa [#allocation6 + $0x1], 0  ;;  %s1945_s21 = smov 0   ;;  %s1947_s22 = smov 0  }
   0x4   :  { %s1949_s23 = smov 0   ;;  %s1951_s24 = smov 0  }
   0x5 LB: > { %s1966_s25 = sadd.s32 4294967295, %s1878_s24   ;;  %s1605_s26 = sadd.s32 4294967294, %s1878_s24   ;;  %s1878_s24 = sphi %s1951_s24, %s2582_s24   ;;  %s1874_s23 = sphi %s1949_s23, %s2581_s23   ;;  %s1870_s22 = sphi %s1947_s22, %s2580_s22   ;;  %s1866_s21 = sphi %s1945_s21, %s2579_s21  }
   0x6   : > { %s1970_s27 = sadd.s32 1, %s1878_s24   ;;  %s29_s28 = sadd.s32 1, %s1874_s23 }
   0x7   : > { %s26_s29 = ssub.s32 %s1878_s24, %s1970_s27  ;;  %p36_p0 = scmp.ne.s32.totalorder %s1874_s23, %s1870_s22 }
   0x8   : > { %p27_p1 = scmp.eq.s32.totalorder %s26_s29, 0  ;;  %p37_p2 = scmp.eq.s32.totalorder %s1878_s24, 0 }
   0x9   : > { %p42_p3 = scmp.ne.s32.totalorder %s1870_s22, %s1866_s21  ;;  %p43_p4 = scmp.eq.s32.totalorder %s1966_s25, 0 }
   0xa   : > { %s1982_s30 = scalar_select %p27_p1, %s1874_s23, %s29_s28  }
   0xb   : > { %p1984_p5 = por %p37_p2, %p36_p0  ;;  %p1988_p6 = por %p43_p4, %p42_p3 }
   0xc   : > { %p171_p7 = scmp.eq.s32.totalorder %s1966_s25, 1  ;;  %p177_p8 = scmp.eq.s32.totalorder %s1605_s26, 1 }
   0xd   : > { %p1707_p10 = scmp.lt.s32.totalorder %s1878_s24, 2  ;;  %s212_s11 = sand.u32 1, %s1874_s23  }
   0xe   : > { %p1995_p11 = por %p171_p7, %p36_p0  ;;  %p1999_p12 = por %p177_p8, %p42_p3 }
   0xf   : > { %s1692_s12 = sshll.u32 %s1878_s24, 12  ;;  %s1608_s13 = sshll.u32 %s212_s11, 8 }
  0x10   : > { %s2573_s9 = scalar_select %p1995_p11, 1, 0 }
  0x11   : > { %s2574_s10 = scalar_select %p1999_p12, 1, 0 }
  0x12   : > { %s2008_s16 = scalar_lea.hbm %s2563_s0, %s1692_s12  ;;  %s216_s17 = scalar_lea.vmem [#allocation4], %s1608_s13 }
  0x13   : > { %s224_s18 = sshll.u32 %s216_s17, 4  ;;  %p2012_p13 = pnand %p1707_p10, %p1984_p5  ;;  %s2016_s18 = int_to_ptr.vmem [resolvable:$true] %s224_s18 }
  0x14   : > { %s2018_s20 = scalar_lea.sflag [#allocation5], %s212_s11  ;;  %s1782_s26 = scalar_lea.hbm %s2008_s16, 4096 }
  0x15   : > { %p1783_p0 = scmp.ne.s32.totalorder %s2008_s16, %s1782_s26  ;;  %p1784_p1 = pneg %p2012_p13 }
  0x16   : > { %s1787_s7 = scalar_lea.hbm %s2563_s0, 8192  ;;  %p1788_p4 = scmp.lt.u32.totalorder %s2008_s16, %s2563_s0 }
  0x17   : > { %p1785_p2 = pnand %p1784_p1, %p1783_p0  ;;  %p1789_p5 = scmp.lt.u32.totalorder %s1787_s7, %s1782_s26 }
  0x18   : > { %p1791_p8 = scmp.lt.u32.totalorder %s1782_s26, %s2008_s16 }
  0x19   : > { %p1786_p3 = pneg %p1785_p2  ;;  %p1790_p7 = por %p1789_p5, %p1788_p4 }
  0x1b   : > { %p1792_p10 = por %p1791_p8, %p1790_p7 }
  0x1d   : > { %p1793_p9 = pnand %p1792_p10, %p1786_p3 }
  0x1f   : > { %1796 = shalt.err (!%p1793_p9)
}
  0x20   : > { %s1797_s11 = scalar_lea.vmem %s2016_s18, 4096  ;;  %s1880_s14 = smov [#allocation4]  }
  0x21   : > { %p1798_p0 = scmp.ne.s32.totalorder %s2016_s18, %s1797_s11  ;;  %s1802_s15 = sshll.u32 %s1880_s14, 4  ;;  %s1803_s15 = int_to_ptr.vmem [resolvable:$false] %s1802_s15 }
  0x22   : > { %s1804_s17 = scalar_lea.vmem %s1803_s15, 8192  ;;  %p1805_p11 = scmp.lt.s32.totalorder %s2016_s18, %s1803_s15 }
  0x23   : > { %p1800_p2 = pnand %p1798_p0, %p1784_p1  ;;  %p1806_p4 = scmp.lt.s32.totalorder %s1804_s17, %s1797_s11 }
  0x25   : > { %p1801_p12 = pneg %p1800_p2  ;;  %p1807_p5 = por %p1806_p4, %p1805_p11 }
  0x27   : > { %p1808_p7 = pnand %p1807_p5, %p1801_p12 }
  0x29   : > { %1811 = shalt.err (!%p1808_p7)
}
  0x2a   : > { %s1881_s26 = smov 256   ;;  %s1882_s28 = smov 16  }
  0x2b   : > { %1702 = dma.hbm_to_vmem [thread:$0]  (!%p2012_p13), %s2008_s16, 4096, %s2016_s18, %s2018_s20, %s1881_s26, %s1881_s26, %s1882_s28  }
  0x2c   : > { %p1612_p9 = scmp.ge.s32.totalorder %s1878_s24, 1  ;;  %p232_p1 = scmp.lt.s32.totalorder %s1878_s24, 3 }
  0x2e   : > { %p233_p3 = pnand %p1612_p9, %p232_p1 }
  0x2f   : > { %s2049_s29 = sand.u32 (!%p233_p3), 1, %s1870_s22  }
  0x30   : > { %236 = sbr.rel (%p233_p3) target bundleno = 1122 (0x462), region = 44  ;;  %s1613_s7 = sshll.u32 (!%p233_p3), %s2049_s29, 8 }
  0x31   : > { %s239_s12 = scalar_lea.sflag (!%p233_p3), [#allocation5], %s2049_s29  ;;  %s2055_s13 = scalar_lea.vmem (!%p233_p3), [#allocation4], %s1613_s7 }
  0x37   : > { %1857 = dma.done.wait (%p1988_p6), %s239_s12, 4096  }
  0x38   : > { %1859 = vsyncadd (%p1988_p6), %s239_s12, 4294963200  ;;  %v1883_v0 = vmov 0   ;;  %v294_v1 = vld [vmem:[%s2055_s13 + $0x8] sm:$0xff]  ;;  %v296_v2 = vld [vmem:[%s2055_s13 + $0x18] sm:$0xff]  ;;  %v518_v31 = vlaneseq  ;;  %vm334_vm0 = vcmask 523264   ;;  %s1884_s28 = smov 68  }
  0x39   : > { %370 = vmatprep.mubr.bf16.mxu0 %v1883_v0  ;;  %286 = vst [vmem:[#allocation2] sm:$0xff] %v1883_v0  ;;  %288 = vst [vmem:[#allocation2 + $0x10] sm:$0xff] %v1883_v0  ;;  %472 = vmatprep.mubr.bf16.mxu1 %v1883_v0  ;;  %v1618_v3 = vld [vmem:[%s2055_s13 + $0x88] sm:$0xff]  ;;  %v310_v4 = vpack.c.bf16 %v296_v2, %v294_v1  ;;  %v1620_v5 = vld [vmem:[%s2055_s13 + $0x98] sm:$0xff]  ;;  %s1885_s12 = smov 4   ;;  %s1886_s8 = smov 32  }
  0x3a   : > { %290 = vst [vmem:[#allocation2 + $0x20] sm:$0xff] %v1883_v0  ;;  %1769 = vset.pattern.permute.xlu0 %v1883_v0  ;;  %1770 = vset.pattern.permute.xlu1 %v1883_v0  ;;  %v293_v6 = vld [vmem:[%s2055_s13] sm:$0xff]  ;;  %v295_v7 = vld [vmem:[%s2055_s13 + $0x10] sm:$0xff]  ;;  %v423_v8 = vpack.c.bf16 %v1620_v5, %v1618_v3  ;;  %v298_v12 = vld [vmem:[%s2055_s13 + $0x28] sm:$0xff]  ;;  %v519_v48 = vshrl.u32 %v518_v31, 7  ;;  %s1887_s16 = smov 72  }
  0x3b   : > { %v309_v9 = vpack.c.bf16 %v295_v7, %v293_v6  ;;  %v1617_v10 = vld [vmem:[%s2055_s13 + $0x80] sm:$0xff]  ;;  %v1619_v11 = vld [vmem:[%s2055_s13 + $0x90] sm:$0xff]  ;;  %338 = vmatprep.subr.bf16.mxu0 %v310_v4  ;;  %v300_v14 = vld [vmem:[%s2055_s13 + $0x38] sm:$0xff]  ;;  %s1888_s18 = smov 100   ;;  %s1889_s19 = smov 36   ;;  %vm291_vm1 = vcmask 64512  }
  0x3c   : > { %v422_v13 = vpack.c.bf16 %v1619_v11, %v1617_v10  ;;  %v1622_v15 = vld [vmem:[%s2055_s13 + $0xa8] sm:$0xff]  ;;  %v1624_v16 = vld [vmem:[%s2055_s13 + $0xb8] sm:$0xff]  ;;  %440 = vmatprep.subr.bf16.mxu1 %v423_v8  ;;  %v312_v17 = vpack.c.bf16 %v300_v14, %v298_v12  ;;  %v297_v19 = vld [vmem:[%s2055_s13 + $0x20] sm:$0xff]  ;;  %v520_v57 = vsub.s32 0, %v519_v48  ;;  %v687_v5 = vsub.s32 1, %v519_v48  ;;  %s1890_s20 = smov 104  }
  0x3d   : > { %339 = vmatpush1.bf16.msra.mxu0 %v309_v9  ;;  %v425_v18 = vpack.c.bf16 %v1624_v16, %v1622_v15  ;;  %v299_v20 = vld [vmem:[%s2055_s13 + $0x30] sm:$0xff]  ;;  %v1621_v21 = vld [vmem:[%s2055_s13 + $0xa0] sm:$0xff]  ;;  %v302_v24 = vld [vmem:[%s2055_s13 + $0x48] sm:$0xff]  ;;  %v831_v11 = vsub.s32 2, %v519_v48  ;;  %s1891_s11 = smov 64   ;;  %292 = vst.msk [vmem:[#allocation2 + $0x28] sm:$0xff] %vm291_vm1, %v1883_v0 }
  0x3e   : > { %441 = vmatpush1.bf16.msra.mxu1 %v422_v13  ;;  %v311_v22 = vpack.c.bf16 %v299_v20, %v297_v19  ;;  %v1623_v23 = vld [vmem:[%s2055_s13 + $0xb0] sm:$0xff]  ;;  %v304_v25 = vld [vmem:[%s2055_s13 + $0x58] sm:$0xff]  ;;  %340 = vmatprep.subr.bf16.mxu0 %v312_v17  ;;  %v1626_v28 = vld [vmem:[%s2055_s13 + $0xc8] sm:$0xff]  ;;  %s1892_s14 = smov 102   ;;  %s1893_s15 = smov 34   ;;  %vm393_vm2 = vcmask 277504  }
  0x3f   : > { %442 = vmatprep.subr.bf16.mxu1 %v425_v18  ;;  %v424_v26 = vpack.c.bf16 %v1623_v23, %v1621_v21  ;;  %v314_v27 = vpack.c.bf16 %v304_v25, %v302_v24  ;;  %v1628_v29 = vld [vmem:[%s2055_s13 + $0xd8] sm:$0xff]  ;;  %v301_v30 = vld [vmem:[%s2055_s13 + $0x40] sm:$0xff]  ;;  %v303_v33 = vld [vmem:[%s2055_s13 + $0x50] sm:$0xff]  ;;  %s1894_s17 = smov 8   ;;  %vm500_vm3 = vcmask 1048368   ;;  %vm398_vm4 = vcmask 1047824  }
  0x40   : > { %v427_v32 = vpack.c.bf16 %v1628_v29, %v1626_v28  ;;  %v1625_v34 = vld [vmem:[%s2055_s13 + $0xc0] sm:$0xff]  ;;  %v1627_v35 = vld [vmem:[%s2055_s13 + $0xd0] sm:$0xff]  ;;  %v313_v36 = vpack.c.bf16 %v303_v33, %v301_v30  ;;  %v306_v37 = vld [vmem:[%s2055_s13 + $0x68] sm:$0xff]  ;;  %vm495_vm5 = vcmask 834560   ;;  %s1895_s26 = smov 126   ;;  %vm627_vm6 = vcmask 31744  }
  0x41   : > { %341 = vmatpush1.bf16.msra.mxu0 %v311_v22  ;;  %v308_v38 = vld [vmem:[%s2055_s13 + $0x78] sm:$0xff]  ;;  %v1630_v39 = vld [vmem:[%s2055_s13 + $0xe8] sm:$0xff]  ;;  %v426_v40 = vpack.c.bf16 %v1627_v35, %v1625_v34  ;;  %v305_v43 = vld [vmem:[%s2055_s13 + $0x60] sm:$0xff]  ;;  %vm542_vm7 = vcmask 556032   ;;  %vm658_vm8 = vcmask 588800   ;;  %vm699_vm9 = vcmask 261120  }
  0x42   : > { %443 = vmatpush1.bf16.msra.mxu1 %v424_v26  ;;  %342 = vmatprep.subr.bf16.mxu0 %v314_v27  ;;  %v316_v41 = vpack.c.bf16 %v308_v38, %v306_v37  ;;  %v1632_v42 = vld [vmem:[%s2055_s13 + $0xf8] sm:$0xff]  ;;  %v307_v44 = vld [vmem:[%s2055_s13 + $0x70] sm:$0xff]  ;;  %v1629_v46 = vld [vmem:[%s2055_s13 + $0xe0] sm:$0xff]  ;;  %vm730_vm10 = vcmask 818176   ;;  %vm771_vm11 = vcmask 293888   ;;  %vm802_vm12 = vcmask 850944  }
  0x43   : > { %444 = vmatprep.subr.bf16.mxu1 %v427_v32  ;;  %v429_v45 = vpack.c.bf16 %v1632_v42, %v1630_v39  ;;  %v1631_v47 = vld [vmem:[%s2055_s13 + $0xf0] sm:$0xff]  ;;  %v315_v49 = vpack.c.bf16 %v307_v44, %v305_v43  ;;  %v275_v53 = vld [vmem:[%s2567_s4 + $0x8] sm:$0xff]  ;;  %vm1060_vm13 = vcmask 130048   ;;  %vm926_vm14 = vcmask 998400   ;;  %p2576_p11 = scmp.ne.s32.totalorder %s2573_s9, 0 }
  0x44   : > { %v274_v50 = vld [vmem:[%s2567_s4] sm:$0xff]  ;;  %v428_v51 = vpack.c.bf16 %v1631_v47, %v1629_v46  ;;  %vm578_vm15 = vcmask 1031168  }
  0x45   : > { %343 = vmatpush1.bf16.msra.mxu0 %v313_v36  ;;  %v1771_v52 = vld [vmem:[%s2564_s1] sm:$0xff]   ;;  %321 = vperm.xlu0 %1769, %v274_v50  }
  0x46   : > { %445 = vmatpush1.bf16.msra.mxu1 %v426_v40  ;;  %344 = vmatprep.subr.bf16.mxu0 %v316_v41  ;;  %v507_v54 = vld [vmem:[%s2568_s5] sm:$0x77] }
  0x47   : > { %446 = vmatprep.subr.bf16.mxu1 %v429_v45  ;;  %v1772_v55 = vld [vmem:[%s2564_s1] sm:$0xff]   ;;  %v1635_v56 = vcombine.low %v507_v54, %v507_v54  ;;  %v1636_v58 = vcombine.high %v507_v54, %v507_v54 }
  0x49   : > { %345 = vmatpush1.bf16.msra.mxu0 %v315_v49  ;;  %v516_v59 = vpack.i.b16 %v1635_v56, %v1635_v56  ;;  %v2115_v60 = vpack.i.b16 %v1636_v58, %v1636_v58  ;;  %v607_v61 = vshrl.u32 %v1635_v56, 16  ;;  %v614_v62 = vshrl.u32 %v1636_v58, 16  ;;  %326 = vperm.xlu0 %1769, %v275_v53  }
  0x4a   : > { %447 = vmatpush1.bf16.msra.mxu1 %v428_v51 }
  0x4b   : > { %v2117_v63 = vrot.slane %v516_v59, %v520_v57  ;;  %v2120_v1 = vrot.slane %v2115_v60, %v520_v57  ;;  %v2122_v2 = vpack.i.b16 %v607_v61, %v607_v61  ;;  %v2124_v3 = vpack.i.b16 %v614_v62, %v614_v62 }
  0x4c   : > { %1616 = vmatmul.mubr.msk.bf16.vlgmr.msra.gmra.mrb[0].mxu0 %vm334_vm0, %v1771_v52  ;;  %v692_v7 = vrot.slane %v2115_v60, %v687_v5  ;;  %v688_v8 = vrot.slane %v516_v59, %v687_v5  ;;  %v832_v12 = vrot.slane %v516_v59, %v831_v11  ;;  %v836_v44 = vrot.slane %v2115_v60, %v831_v11 }
  0x4d   : > { %1634 = vmatmul.mubr.msk.bf16.vlgmr.msra.gmra.mrb[0].mxu1 %vm334_vm0, %v1772_v55  ;;  %540 = vrot.lane.b32.xlu1 %v2120_v1, %s1884_s28  ;;  %v620_v4 = vrot.slane %v2124_v3, %v520_v57  ;;  %v613_v6 = vrot.slane %v2122_v2, %v520_v57  ;;  %v760_v9 = vrot.slane %v2122_v2, %v687_v5 }
  0x4e   : > { %538 = vrot.lane.b32.xlu0 %v2117_v63, %s1884_s28  ;;  %v764_v10 = vrot.slane %v2124_v3, %v687_v5  ;;  %v939_v43 = vrot.slane %v2122_v2, %v831_v11  ;;  %v943_v45 = vrot.slane %v2124_v3, %v831_v11  ;;  %v2209_v11 = vld [vmem:[#allocation2 + $0x28] sm:$0xff] }
  0x51   : > { %625 = vrot.lane.b32.xlu1 %v620_v4, %s1885_s12 }
  0x52   : > { %623 = vrot.lane.b32.xlu0 %v613_v6, %s1885_s12 }
  0x55   : > { %697 = vrot.lane.b32.xlu1 %v692_v7, %s1886_s8 }
  0x56   : > { %654 = vrot.lane.b32.xlu0 %v613_v6, %s1887_s16 }
  0x59   : > { %656 = vrot.lane.b32.xlu1 %v620_v4, %s1887_s16  ;;  %s1899_s16 = smov 58  }
  0x5a   : > { %695 = vrot.lane.b32.xlu0 %v688_v8, %s1886_s8  ;;  %s1898_s8 = smov 122  }
  0x5d   : > { %728 = vrot.lane.b32.xlu1 %v692_v7, %s1888_s18 }
  0x5e   : > { %726 = vrot.lane.b32.xlu0 %v688_v8, %s1888_s18  ;;  %s1900_s18 = smov 96  }
  0x61   : > { %769 = vrot.lane.b32.xlu1 %v764_v10, %s1889_s19 }
  0x62   : > { %767 = vrot.lane.b32.xlu0 %v760_v9, %s1889_s19  ;;  %s1901_s19 = smov 92  }
  0x65   : > { %800 = vrot.lane.b32.xlu1 %v764_v10, %s1890_s20 }
  0x66   : > { %798 = vrot.lane.b32.xlu0 %v760_v9, %s1890_s20  ;;  %s1902_s20 = smov 56  }
  0x6a   : > { %839 = vrot.lane.b32.xlu0 %v832_v12, %s1891_s11 }
  0xbf   : > { %v2164_v47 = vpop.permute.xlu1 %540 }
  0xc3   : > { %v2168_v49 = vpop.permute.xlu1 %625 }
  0xc4   : > { %v322_v13 = vpop.permute.xlu0 %321 }
  0xc7   : > { %v2172_v51 = vpop.permute.xlu1 %697 }
  0xc8   : > { %v327_v14 = vpop.permute.xlu0 %326 }
  0xcb   : > { %v2176_v53 = vpop.permute.xlu1 %656 }
  0xcc   : > { %v2162_v46 = vpop.permute.xlu0 %538 }
  0xcf   : > { %v2180_v55 = vpop.permute.xlu1 %728 }
  0xd0   : > { %v2166_v48 = vpop.permute.xlu0 %623 }
  0xd3   : > { %v2184_v57 = vpop.permute.xlu1 %769 }
  0xd4   : > { %v2170_v50 = vpop.permute.xlu0 %654 }
  0xd7   : > { %v2188_v59 = vpop.permute.xlu1 %800 }
  0xd8   : > { %v2174_v52 = vpop.permute.xlu0 %695 }
  0xdc   : > { %v2178_v54 = vpop.permute.xlu0 %726 }
  0xe0   : > { %v2182_v56 = vpop.permute.xlu0 %767 }
  0xe4   : > { %v2186_v58 = vpop.permute.xlu0 %798 }
  0xe8   : > { %v840_v60 = vpop.permute.xlu0 %839 }
 0x11f   : > { %v372_v15 = vpop.f32.mrb[0].mxu0 }
 0x120   : > { %v373_v16 = vadd.f32 %v372_v15, %v322_v13  ;;  %v474_v17 = vpop.f32.mrb[0].mxu1  ;;  %v374_v18 = vpop.f32.mrb[1].mxu0 }
 0x121   : > { %v475_v19 = vadd.f32 %v474_v17, %v322_v13  ;;  %v375_v20 = vadd.f32 %v374_v18, %v322_v13  ;;  %v476_v21 = vpop.f32.mrb[1].mxu1  ;;  %v376_v22 = vpop.f32.mrb[2].mxu0 }
 0x122   : > { %v477_v23 = vadd.f32 %v476_v21, %v322_v13  ;;  %v377_v24 = vadd.f32 %v376_v22, %v327_v14  ;;  %v478_v25 = vpop.f32.mrb[2].mxu1  ;;  %v378_v26 = vpop.f32.mrb[3].mxu0  ;;  %v381_v30 = vmax.f32 %v373_v16, 0.0 }
 0x123   : > { %v479_v27 = vadd.f32 %v478_v25, %v327_v14  ;;  %v379_v28 = vadd.f32 %v378_v26, %v327_v14  ;;  %v480_v29 = vpop.f32.mrb[3].mxu1  ;;  %v483_v33 = vmax.f32 %v475_v19, 0.0  ;;  %v382_v34 = vmax.f32 %v375_v20, 0.0 }
 0x124   : > { %v383_v31 = vmax.f32 %v377_v24, 0.0  ;;  %v481_v32 = vadd.f32 %v480_v29, %v327_v14  ;;  %v484_v37 = vmax.f32 %v477_v23, 0.0  ;;  %v543_v26 = vsel %vm542_vm7, %v2162_v46, %v2164_v47 }
 0x125   : > { %v485_v35 = vmax.f32 %v479_v27, 0.0  ;;  %v384_v36 = vmax.f32 %v379_v28, 0.0  ;;  %v628_v28 = vsel %vm627_vm6, %v2166_v48, %v2168_v49 }
 0x126   : > { %v2142_v38 = vpack.c.bf16 %v383_v31, %v381_v30  ;;  %v486_v39 = vmax.f32 %v481_v32, 0.0  ;;  %v659_v31 = vsel %vm658_vm8, %v2170_v50, %v2176_v53  ;;  %vm819_vm8 = vcmask 195584  }
 0x127   : > { %v2144_v40 = vpack.c.bf16 %v485_v35, %v483_v33  ;;  %v2146_v41 = vpack.c.bf16 %v384_v36, %v382_v34  ;;  %v700_v34 = vsel %vm699_vm9, %v2174_v52, %v2172_v51  ;;  %vm907_vm9 = vcmask 506880  }
 0x128   : > { %v2148_v42 = vpack.c.bf16 %v486_v39, %v484_v37  ;;  %v731_v37 = vsel %vm730_vm10, %v2178_v54, %v2180_v55  ;;  %vm996_vm10 = vcmask 982016  }
 0x129   : > { %491 = vrot.lane.b32.xlu1 %v2144_v40, %s1892_s14  ;;  %391 = vrot.lane.b32.xlu0 %v2146_v41, %s1893_s15 }
 0x12d   : > { %389 = vrot.lane.b32.xlu1 %v2142_v38, %s1893_s15  ;;  %869 = vrot.lane.b32.xlu0 %v832_v12, %s1885_s12  ;;  %s1904_s15 = smov 60  }
 0x131   : > { %493 = vrot.lane.b32.xlu1 %v2148_v42, %s1892_s14  ;;  %946 = vrot.lane.b32.xlu0 %v939_v43, %s1884_s28  ;;  %s1903_s14 = smov 28  }
 0x135   : > { %841 = vrot.lane.b32.xlu1 %v836_v44, %s1891_s11  ;;  %975 = vrot.lane.b32.xlu0 %v939_v43, %s1894_s17 }
 0x139   : > { %871 = vrot.lane.b32.xlu1 %v836_v44, %s1885_s12  ;;  %s1897_s12 = smov 124   ;;  %v772_v44 = vsel %vm771_vm11, %v2182_v56, %v2184_v57 }
 0x13d   : > { %948 = vrot.lane.b32.xlu1 %v943_v45, %s1884_s28  ;;  %s1896_s28 = smov 62  }
 0x141   : > { %977 = vrot.lane.b32.xlu1 %v943_v45, %s1894_s17  ;;  %s1905_s17 = smov 24  }
 0x19b   : > { %v492_v61 = vpop.permute.xlu1 %491  ;;  %v392_v62 = vpop.permute.xlu0 %391 }
 0x19c   : > { %402 = vst.msk [vmem:[#allocation2 + $0x10] sm:$0xff] %vm393_vm2, %v392_v62 }
 0x19d   : > { %501 = vst.msk [vmem:[#allocation2 + $0x10] sm:$0xff] %vm500_vm3, %v492_v61  ;;  %vm675_vm3 = vcmask 457728  }
 0x19f   : > { %v390_v2 = vpop.permute.xlu1 %389  ;;  %v2247_v21 = vpop.permute.xlu0 %869 }
 0x1a0   : > { %v2190_v3 = vsel %vm393_vm2, %v390_v2, %v392_v62  ;;  %399 = vst.msk [vmem:[#allocation2] sm:$0xff] %vm398_vm4, %v390_v2  ;;  %vm597_vm2 = vcmask 474112   ;;  %vm644_vm4 = vcmask 1014784  }
 0x1a1   : > { %v530_v4 = vmul.bf16 %v2120_v1, %v2190_v3  ;;  %v633_v29 = vmul.bf16 %v628_v28, %v2190_v3  ;;  %v705_v35 = vmul.bf16 %v700_v34, %v2190_v3 }
 0x1a3   : > { %v494_v5 = vpop.permute.xlu1 %493  ;;  %1064 = vmatprep.subr.bf16.mxu0 %v530_v4 }
 0x1a4   : > { %v2194_v6 = vsel %vm495_vm5, %v492_v61, %v494_v5  ;;  %504 = vst.msk [vmem:[#allocation2 + $0x20] sm:$0xff] %vm495_vm5, %v494_v5  ;;  %v277_v5 = vld [vmem:[%s2567_s4 + $0x18] sm:$0xff]  ;;  %vm747_vm5 = vcmask 228352  }
 0x1a5   : > { %v548_v27 = vmul.bf16 %v543_v26, %v2194_v6  ;;  %v664_v32 = vmul.bf16 %v659_v31, %v2194_v6  ;;  %v736_v39 = vmul.bf16 %v731_v37, %v2194_v6  ;;  %v877_v2 = vmul.bf16 %v2247_v21, %v2194_v6 }
 0x1a7   : > { %v2196_v7 = vpop.permute.xlu1 %841  ;;  %v2198_v8 = vld [vmem:[#allocation2] sm:$0xff] }
 0x1a8   : > { %v2202_v9 = vsel %vm334_vm0, %v840_v60, %v2196_v7  ;;  %572 = vrot.lane.b32.xlu1 %v2198_v8, %s1895_s26  ;;  %v529_v10 = vmul.bf16 %v2198_v8, %v2117_v63  ;;  %v2222_v63 = vld [vmem:[#allocation2 + $0x10] sm:$0xff]  ;;  %v632_v15 = vmul.bf16 %v2198_v8, %v2166_v48  ;;  %v704_v16 = vmul.bf16 %v2198_v8, %v2174_v52 }
 0x1a9   : > { %v849_v1 = vmul.bf16 %v2202_v9, %v2190_v3  ;;  %v776_v17 = vmul.bf16 %v2198_v8, %v2182_v56  ;;  %v848_v18 = vmul.bf16 %v2198_v8, %v840_v60  ;;  %v547_v30 = vmul.bf16 %v2222_v63, %v2162_v46  ;;  %v285_v9 = vld [vmem:[%s2567_s4 + $0x58] sm:$0xff] }
 0x1aa   : > { %1065 = vmatpush1.bf16.msra.mxu0 %v529_v10  ;;  %v634_v33 = vmul.bf16 %v2222_v63, %v2168_v49  ;;  %v663_v36 = vmul.bf16 %v2222_v63, %v2170_v50  ;;  %v706_v43 = vmul.bf16 %v2222_v63, %v2172_v51  ;;  %v777_v46 = vmul.bf16 %v772_v44, %v2190_v3  ;;  %v276_v10 = vld [vmem:[%s2567_s4 + $0x10] sm:$0xff] }
 0x1ab   : > { %v872_v12 = vpop.permute.xlu1 %871  ;;  %v2215_v14 = vld [vmem:[#allocation2 + $0x20] sm:$0xff]  ;;  %v735_v48 = vmul.bf16 %v2222_v63, %v2178_v54  ;;  %v803_v49 = vsel %vm802_vm12, %v2186_v58, %v2188_v59  ;;  %v778_v52 = vmul.bf16 %v2222_v63, %v2184_v57  ;;  %v807_v54 = vmul.bf16 %v2222_v63, %v2186_v58 }
 0x1ac   : > { %v879_v13 = vmul.bf16 %v872_v12, %v2209_v11  ;;  %901 = vrot.lane.b32.xlu1 %v2198_v8, %s1896_s28  ;;  %v665_v19 = vmul.bf16 %v2215_v14, %v2176_v53  ;;  %v737_v20 = vmul.bf16 %v2215_v14, %v2180_v55  ;;  %v549_v22 = vmul.bf16 %v2215_v14, %v2164_v47  ;;  %v947_v47 = vpop.permute.xlu0 %946  ;;  %v1775_v58 = vld [vmem:[%s2565_s2 + $0x4] ss:$8 sps:$4 sm:$0xff]  }
 0x1ad   : > { %v873_v23 = vsel %vm627_vm6, %v2247_v21, %v872_v12  ;;  %v809_v24 = vmul.bf16 %v2215_v14, %v2188_v59  ;;  %v808_v50 = vmul.bf16 %v803_v49, %v2194_v6  ;;  %v850_v61 = vmul.bf16 %v2196_v7, %v2222_v63  ;;  %1639 = vmatprep.mubr.msk.bf16.mxu0 %vm1060_vm13, %v1775_v58  ;;  %v279_v7 = vld [vmem:[%s2567_s4 + $0x28] sm:$0xff] }
 0x1ae   : > { %887 = vrot.lane.b32.xlu0 %v879_v13, %s1897_s12  ;;  %v878_v25 = vmul.bf16 %v873_v23, %v2215_v14  ;;  %v954_v62 = vmul.bf16 %v947_v47, %v2198_v8  ;;  %1640 = vmatprep.mubr.msk.bf16.mxu1 %vm1060_vm13, %v1775_v58  ;;  %v281_v8 = vld [vmem:[%s2567_s4 + $0x38] sm:$0xff]  ;;  %v280_v13 = vld [vmem:[%s2567_s4 + $0x30] sm:$0xff]  ;;  %vm716_vm6 = vcmask 785408  }
 0x1af   : > { %v949_v45 = vpop.permute.xlu1 %948 }
 0x1b0   : > { %922 = vrot.lane.b32.xlu1 %v2215_v14, %s1898_s8  ;;  %v976_v53 = vpop.permute.xlu0 %975  ;;  %v950_v57 = vsel %vm542_vm7, %v947_v47, %v949_v45  ;;  %vm788_vm7 = vcmask 752640  }
 0x1b1   : > { %v955_v60 = vmul.bf16 %v950_v57, %v2190_v3  ;;  %v984_v4 = vmul.bf16 %v976_v53, %v2194_v6 }
 0x1b2   : > { %924 = vrot.lane.b32.xlu0 %v2209_v11, %s1898_s8 }
 0x1b3   : > { %v978_v51 = vpop.permute.xlu1 %977 }
 0x1b4   : > { %574 = vrot.lane.b32.xlu1 %v2190_v3, %s1895_s26  ;;  %v980_v55 = vsel %vm291_vm1, %v976_v53, %v978_v51  ;;  %v986_v59 = vmul.bf16 %v978_v51, %v2209_v11  ;;  %v278_v11 = vld [vmem:[%s2567_s4 + $0x20] sm:$0xff]  ;;  %vm559_vm1 = vcmask 490496  }
 0x1b5   : > { %v985_v56 = vmul.bf16 %v980_v55, %v2215_v14 }
 0x1b6   : > { %595 = vrot.lane.b32.xlu0 %v2215_v14, %s1899_s16 }
 0x1b8   : > { %593 = vrot.lane.b32.xlu1 %v2194_v6, %s1899_s16 }
 0x1ba   : > { %576 = vrot.lane.b32.xlu0 %v2222_v63, %s1895_s26  ;;  %s1906_s26 = smov 120  }
 0x1bc   : > { %638 = vrot.lane.b32.xlu1 %v632_v15, %s1897_s12  ;;  %v282_v15 = vld [vmem:[%s2567_s4 + $0x40] sm:$0xff] }
 0x1be   : > { %591 = vrot.lane.b32.xlu0 %v2222_v63, %s1899_s16 }
 0x1c0   : > { %710 = vrot.lane.b32.xlu1 %v704_v16, %s1900_s18 }
 0x1c2   : > { %905 = vrot.lane.b32.xlu0 %v2222_v63, %s1896_s28 }
 0x1c4   : > { %782 = vrot.lane.b32.xlu1 %v776_v17, %s1901_s19 }
 0x1c6   : > { %920 = vrot.lane.b32.xlu0 %v2194_v6, %s1898_s8  ;;  %v283_v6 = vld [vmem:[%s2567_s4 + $0x48] sm:$0xff]  ;;  %s1907_s8 = smov [#allocation7]  }
 0x1c7   : > { %s1816_s16 = sshll.u32 %s1907_s8, 4  ;;  %s1817_s16 = int_to_ptr.vmem [resolvable:$false] %s1816_s16 }
 0x1c8   : > { %854 = vrot.lane.b32.xlu1 %v848_v18, %s1891_s11 }
 0x1ca   : > { %673 = vrot.lane.b32.xlu0 %v665_v19, %s1902_s20  ;;  %v284_v19 = vld [vmem:[%s2567_s4 + $0x50] sm:$0xff] }
 0x1cc   : > { %903 = vrot.lane.b32.xlu1 %v2190_v3, %s1896_s28  ;;  %v956_v3 = vmul.bf16 %v949_v45, %v2222_v63 }
 0x1ce   : > { %745 = vrot.lane.b32.xlu0 %v737_v20, %s1903_s14 }
 0x1d0   : > { %557 = vrot.lane.b32.xlu1 %v549_v22, %s1904_s15 }
 0x1d2   : > { %817 = vrot.lane.b32.xlu0 %v809_v24, %s1905_s17 }
 0x1d4   : > { %885 = vrot.lane.b32.xlu1 %v878_v25, %s1897_s12 }
 0x1d6   : > { %555 = vrot.lane.b32.xlu0 %v548_v27, %s1904_s15 }
 0x1d8   : > { %640 = vrot.lane.b32.xlu1 %v633_v29, %s1897_s12 }
 0x1da   : > { %553 = vrot.lane.b32.xlu0 %v547_v30, %s1904_s15 }
 0x1dc   : > { %671 = vrot.lane.b32.xlu1 %v664_v32, %s1902_s20 }
 0x1de   : > { %642 = vrot.lane.b32.xlu0 %v634_v33, %s1897_s12 }
 0x1e0   : > { %712 = vrot.lane.b32.xlu1 %v705_v35, %s1900_s18 }
 0x1e2   : > { %669 = vrot.lane.b32.xlu0 %v663_v36, %s1902_s20 }
 0x1e4   : > { %743 = vrot.lane.b32.xlu1 %v736_v39, %s1903_s14 }
 0x1e6   : > { %714 = vrot.lane.b32.xlu0 %v706_v43, %s1900_s18 }
 0x1e8   : > { %784 = vrot.lane.b32.xlu1 %v777_v46, %s1901_s19 }
 0x1ea   : > { %741 = vrot.lane.b32.xlu0 %v735_v48, %s1903_s14 }
 0x1ec   : > { %815 = vrot.lane.b32.xlu1 %v808_v50, %s1905_s17 }
 0x1ee   : > { %786 = vrot.lane.b32.xlu0 %v778_v52, %s1901_s19 }
 0x1f0   : > { %856 = vrot.lane.b32.xlu1 %v849_v1, %s1891_s11 }
 0x1f2   : > { %813 = vrot.lane.b32.xlu0 %v807_v54, %s1905_s17 }
 0x1f4   : > { %992 = vrot.lane.b32.xlu1 %v985_v56, %s1906_s26 }
 0x1f6   : > { %994 = vrot.lane.b32.xlu0 %v986_v59, %s1906_s26 }
 0x1f8   : > { %962 = vrot.lane.b32.xlu1 %v955_v60, %s1904_s15 }
 0x1fa   : > { %858 = vrot.lane.b32.xlu0 %v850_v61, %s1891_s11  ;;  %s1818_s11 = scalar_lea.vmem %s1817_s16, 8192 }
 0x1fc   : > { %960 = vrot.lane.b32.xlu1 %v954_v62, %s1904_s15 }
 0x1fe   : > { %883 = vrot.lane.b32.xlu0 %v877_v2, %s1897_s12  ;;  %s2454_s12 = scalar_lea.vmem [#allocation7], %s1613_s7  ;;  %s1694_s7 = sshll.u32 %s1966_s25, 12 }
 0x1ff   : > { %s1518_s25 = scalar_lea.sflag [#allocation6], %s2049_s29 }
 0x200   : > { %1043 = vperm.xlu1 %1770, %v276_v10  }
 0x202   : > { %964 = vrot.lane.b32.xlu0 %v956_v3, %s1904_s15  ;;  %s1532_s15 = sshll.u32 %s2454_s12, 4  ;;  %s2516_s15 = int_to_ptr.vmem [resolvable:$true] %s1532_s15 }
 0x203   : > { %s1812_s28 = scalar_lea.vmem %s2516_s15, 4096  ;;  %p1819_p8 = scmp.lt.s32.totalorder %s2516_s15, %s1817_s16 }
 0x204   : > { %1172 = vperm.xlu1 %1770, %v278_v11   ;;  %p1813_p6 = scmp.ne.s32.totalorder %s2516_s15, %s1812_s28  ;;  %p1820_p10 = scmp.lt.s32.totalorder %s1818_s11, %s1812_s28 }
 0x206   : > { %990 = vrot.lane.b32.xlu0 %v984_v4, %s1906_s26  ;;  %s2514_s26 = scalar_lea.hbm %s2569_s6, %s1694_s7  ;;  %p1814_p12 = pnand %p1813_p6, %p2576_p11 }
 0x207   : > { %p1821_p0 = por %p1820_p10, %p1819_p8 }
 0x208   : > { %1182 = vperm.xlu1 %1770, %v280_v13   ;;  %p1815_p13 = pneg %p1814_p12 }
 0x20a   : > { %1048 = vperm.xlu0 %1769, %v277_v5   ;;  %p1822_p2 = pnand %p1821_p0, %p1815_p13 }
 0x20c   : > { %1192 = vperm.xlu1 %1770, %v282_v15  }
 0x20e   : > { %1177 = vperm.xlu0 %1769, %v279_v7  }
 0x210   : > { %1202 = vperm.xlu1 %1770, %v284_v19  }
 0x212   : > { %1187 = vperm.xlu0 %1769, %v281_v8  }
 0x216   : > { %1197 = vperm.xlu0 %1769, %v283_v6  }
 0x21a   : > { %v573_v1 = vpop.permute.xlu1 %572  ;;  %1207 = vperm.xlu0 %1769, %v285_v9  }
 0x21e   : > { %v2358_v12 = vpop.permute.xlu1 %901 }
 0x220   : > { %v2363_v14 = vpop.permute.xlu0 %887 }
 0x222   : > { %v2365_v63 = vpop.permute.xlu1 %922 }
 0x224   : > { %v925_v16 = vpop.permute.xlu0 %924 }
 0x225   : > { %v2372_v17 = vsel %vm926_vm14, %v2365_v63, %v925_v16 }
 0x226   : > { %v575_v18 = vpop.permute.xlu1 %574 }
 0x227   : > { %v579_v24 = vsel %vm578_vm15, %v573_v1, %v575_v18 }
 0x228   : > { %v596_v20 = vpop.permute.xlu0 %595 }
 0x22a   : > { %v594_v21 = vpop.permute.xlu1 %593 }
 0x22b   : > { %v599_v48 = vsel %vm597_vm2, %v594_v21, %v596_v20 }
 0x22c   : > { %v577_v22 = vpop.permute.xlu0 %576 }
 0x22d   : > { %v580_v23 = vsel %vm578_vm15, %v575_v18, %v577_v22 }
 0x22e   : > { %v639_v25 = vpop.permute.xlu1 %638  ;;  %1066 = vmatprep.subr.bf16.mxu0 %v580_v23 }
 0x22f   : > { %1067 = vmatpush1.bf16.msra.mxu0 %v579_v24 }
 0x230   : > { %v592_v26 = vpop.permute.xlu0 %591 }
 0x231   : > { %v598_v50 = vsel %vm597_vm2, %v592_v26, %v594_v21 }
 0x232   : > { %v711_v27 = vpop.permute.xlu1 %710 }
 0x234   : > { %v2377_v28 = vpop.permute.xlu0 %905 }
 0x236   : > { %v783_v29 = vpop.permute.xlu1 %782 }
 0x238   : > { %v2379_v30 = vpop.permute.xlu0 %920 }
 0x239   : > { %v927_v22 = vsel %vm926_vm14, %v2379_v30, %v2365_v63 }
 0x23a   : > { %v2381_v31 = vpop.permute.xlu1 %854 }
 0x23c   : > { %v674_v32 = vpop.permute.xlu0 %673 }
 0x23e   : > { %v2383_v33 = vpop.permute.xlu1 %903 }
 0x23f   : > { %v909_v16 = vsel %vm907_vm9, %v2383_v33, %v2377_v28  ;;  %v908_v19 = vsel %vm907_vm9, %v2358_v12, %v2383_v33  ;;  %v1777_v12 = vld [vmem:[%s2565_s2] ss:$8 sps:$4 sm:$0xff]  }
 0x240   : > { %v746_v34 = vpop.permute.xlu0 %745 }
 0x242   : > { %v558_v35 = vpop.permute.xlu1 %557 }
 0x244   : > { %v818_v36 = vpop.permute.xlu0 %817 }
 0x246   : > { %v2385_v37 = vpop.permute.xlu1 %885 }
 0x248   : > { %v556_v39 = vpop.permute.xlu0 %555 }
 0x249   : > { %v561_v43 = vsel %vm559_vm1, %v556_v39, %v558_v35 }
 0x24a   : > { %v641_v44 = vpop.permute.xlu1 %640  ;;  %1107 = vmatprep.subr.bf16.mxu1 %v561_v43 }
 0x24b   : > { %v645_v52 = vsel %vm644_vm4, %v639_v25, %v641_v44 }
 0x24c   : > { %v554_v45 = vpop.permute.xlu0 %553 }
 0x24d   : > { %v560_v46 = vsel %vm559_vm1, %v554_v45, %v556_v39 }
 0x24e   : > { %v672_v47 = vpop.permute.xlu1 %671  ;;  %1108 = vmatpush1.bf16.msra.mxu1 %v560_v46 }
 0x24f   : > { %1109 = vmatprep.subr.bf16.mxu1 %v599_v48  ;;  %v677_v55 = vsel %vm675_vm3, %v672_v47, %v674_v32 }
 0x250   : > { %v643_v49 = vpop.permute.xlu0 %642 }
 0x251   : > { %v646_v51 = vsel %vm644_vm4, %v641_v44, %v643_v49 }
 0x252   : > { %v713_v53 = vpop.permute.xlu1 %712  ;;  %1068 = vmatprep.subr.bf16.mxu0 %v646_v51  ;;  %1110 = vmatpush1.bf16.msra.mxu1 %v598_v50 }
 0x253   : > { %1069 = vmatpush1.bf16.msra.mxu0 %v645_v52  ;;  %1111 = vmatprep.subr.bf16.mxu1 %v677_v55  ;;  %v717_v58 = vsel %vm716_vm6, %v711_v27, %v713_v53 }
 0x254   : > { %v670_v54 = vpop.permute.xlu0 %669 }
 0x255   : > { %v676_v56 = vsel %vm675_vm3, %v670_v54, %v672_v47 }
 0x256   : > { %v744_v59 = vpop.permute.xlu1 %743  ;;  %1112 = vmatpush1.bf16.msra.mxu1 %v676_v56 }
 0x257   : > { %v749_v57 = vsel %vm747_vm5, %v744_v59, %v746_v34 }
 0x258   : > { %1113 = vmatprep.subr.bf16.mxu1 %v749_v57  ;;  %v715_v60 = vpop.permute.xlu0 %714 }
 0x259   : > { %v718_v61 = vsel %vm716_vm6, %v713_v53, %v715_v60  ;;  %v1778_v60 = vld [vmem:[%s2566_s3] sm:$0xff]  }
 0x25a   : > { %v785_v62 = vpop.permute.xlu1 %784  ;;  %1070 = vmatprep.subr.bf16.mxu0 %v718_v61 }
 0x25b   : > { %1071 = vmatpush1.bf16.msra.mxu0 %v717_v58  ;;  %v789_v8 = vsel %vm788_vm7, %v783_v29, %v785_v62  ;;  %v1779_v58 = vld [vmem:[%s2566_s3 + $0x8] sm:$0xff]  }
 0x25c   : > { %1072 = vmatprep.subr.bf16.mxu0 %v2146_v41  ;;  %v742_v2 = vpop.permute.xlu0 %741 }
 0x25d   : > { %v748_v3 = vsel %vm747_vm5, %v742_v2, %v744_v59  ;;  %v1781_v2 = vld [vmem:[%s2566_s3 + $0x18] sm:$0xff]  }
 0x25e   : > { %v816_v4 = vpop.permute.xlu1 %815  ;;  %1114 = vmatpush1.bf16.msra.mxu1 %v748_v3 }
 0x25f   : > { %1073 = vmatpush1.bf16.msra.mxu0 %v2142_v38  ;;  %1115 = vmatprep.subr.bf16.mxu1 %v2148_v42  ;;  %v821_v9 = vsel %vm819_vm8, %v816_v4, %v818_v36  ;;  %v890_v38 = vsel %vm644_vm4, %v2385_v37, %v2363_v14 }
 0x260   : > { %v787_v5 = vpop.permute.xlu0 %786 }
 0x261   : > { %v790_v7 = vsel %vm788_vm7, %v785_v62, %v787_v5  ;;  %v1780_v62 = vld [vmem:[%s2566_s3 + $0x10] sm:$0xff]  }
 0x262   : > { %v857_v6 = vpop.permute.xlu1 %856  ;;  %1074 = vmatprep.subr.bf16.mxu0 %v790_v7  ;;  %1116 = vmatpush1.bf16.msra.mxu1 %v2144_v40  ;;  %v1388_v5 = vld [vmem:[%s2055_s13] sm:$0xff] }
 0x263   : > { %1075 = vmatpush1.bf16.msra.mxu0 %v789_v8  ;;  %1117 = vmatprep.subr.bf16.mxu1 %v821_v9  ;;  %v860_v40 = vsel %vm334_vm0, %v2381_v31, %v857_v6 }
 0x264   : > { %v814_v41 = vpop.permute.xlu0 %813 }
 0x265   : > { %v820_v10 = vsel %vm819_vm8, %v814_v41, %v816_v4 }
 0x266   : > { %1118 = vmatpush1.bf16.msra.mxu1 %v820_v10  ;;  %v993_v1 = vpop.permute.xlu1 %992 }
 0x267   : > { %1119 = vmatprep.subr.bf16.mxu1 %v890_v38  ;;  %v1390_v38 = vld [vmem:[%s2055_s13 + $0x10] sm:$0xff] }
 0x268   : > { %v995_v42 = vpop.permute.xlu0 %994 }
 0x269   : > { %v998_v25 = vsel %vm996_vm10, %v993_v1, %v995_v42 }
 0x26a   : > { %v963_v13 = vpop.permute.xlu1 %962 }
 0x26c   : > { %v859_v11 = vpop.permute.xlu0 %858 }
 0x26d   : > { %v861_v15 = vsel %vm334_vm0, %v857_v6, %v859_v11  ;;  %v1389_v6 = vld [vmem:[%s2055_s13 + $0x8] sm:$0xff]  ;;  %v1391_v11 = vld [vmem:[%s2055_s13 + $0x18] sm:$0xff] }
 0x26e   : > { %1076 = vmatprep.subr.bf16.mxu0 %v861_v15  ;;  %v961_v20 = vpop.permute.xlu1 %960  ;;  %v1653_v15 = vld [vmem:[%s2055_s13 + $0x80] sm:$0xff] }
 0x26f   : > { %1077 = vmatpush1.bf16.msra.mxu0 %v860_v40  ;;  %v966_v24 = vsel %vm559_vm1, %v961_v20, %v963_v13 }
 0x270   : > { %1078 = vmatprep.subr.bf16.mxu0 %v909_v16  ;;  %v884_v18 = vpop.permute.xlu0 %883 }
 0x271   : > { %v889_v14 = vsel %vm644_vm4, %v884_v18, %v2385_v37 }
 0x272   : > { %1120 = vmatpush1.bf16.msra.mxu1 %v889_v14 }
 0x273   : > { %1079 = vmatpush1.bf16.msra.mxu0 %v908_v19  ;;  %1121 = vmatprep.subr.bf16.mxu1 %v2372_v17  ;;  %v1654_v19 = vld [vmem:[%s2055_s13 + $0x88] sm:$0xff] }
 0x274   : > { %v965_v21 = vpop.permute.xlu0 %964 }
 0x275   : > { %v967_v23 = vsel %vm559_vm1, %v963_v13, %v965_v21 }
 0x276   : > { %1080 = vmatprep.subr.bf16.mxu0 %v967_v23  ;;  %1122 = vmatpush1.bf16.msra.mxu1 %v927_v22 }
 0x277   : > { %1081 = vmatpush1.bf16.msra.mxu0 %v966_v24  ;;  %1123 = vmatprep.subr.bf16.mxu1 %v998_v25  ;;  %v1655_v24 = vld [vmem:[%s2055_s13 + $0x90] sm:$0xff] }
 0x278   : > { %v991_v17 = vpop.permute.xlu0 %990 }
 0x279   : > { %v997_v26 = vsel %vm996_vm10, %v991_v17, %v993_v1 }
 0x27a   : > { %1097 = vmatmul.mubr.bf16.vlgmr.msra.gmra.mrb[4].mxu0 %v1777_v12  ;;  %1124 = vmatpush1.bf16.msra.mxu1 %v997_v26 }
 0x27b   : > { %1274 = vmatprep.mubr.bf16.mxu0 %v1883_v0 }
 0x27d   : > { %1140 = vmatmul.mubr.bf16.vlgmr.msra.gmra.mrb[4].mxu1 %v1777_v12 }
 0x27e   : > { %1347 = vmatprep.mubr.bf16.mxu1 %v1883_v0 }
 0x27f   : > { %v1044_v63 = vpop.permute.xlu1 %1043 }
 0x283   : > { %v1173_v3 = vpop.permute.xlu1 %1172 }
 0x289   : > { %v1049_v30 = vpop.permute.xlu0 %1048 }
 0x28d   : > { %v1178_v9 = vpop.permute.xlu0 %1177 }
 0x34d   : > { %v1098_v27 = vpop.f32.mrb[4].mxu0 }
 0x34e   : > { %v1099_v28 = vadd.f32 %v1098_v27, %v1044_v63  ;;  %v1100_v29 = vpop.f32.mrb[5].mxu0  ;;  %v1656_v27 = vld [vmem:[%s2055_s13 + $0x98] sm:$0xff] }
 0x34f   : > { %v1101_v31 = vadd.f32 %v1100_v29, %v1044_v63  ;;  %v1102_v32 = vpop.f32.mrb[6].mxu0 }
 0x350   : > { %v1150_v33 = vmax.f32 %v1099_v28, 0.0  ;;  %v1103_v34 = vadd.f32 %v1102_v32, %v1049_v30  ;;  %v1104_v35 = vpop.f32.mrb[7].mxu0  ;;  %v1141_v36 = vpop.f32.mrb[4].mxu1 }
 0x351   : > { %v1151_v37 = vmax.f32 %v1101_v31, 0.0  ;;  %v1105_v39 = vadd.f32 %v1104_v35, %v1049_v30  ;;  %v1142_v43 = vadd.f32 %v1141_v36, %v1044_v63  ;;  %v1143_v44 = vpop.f32.mrb[5].mxu1  ;;  %v1183_v31 = vpop.permute.xlu1 %1182  ;;  %v1392_v36 = vld [vmem:[%s2055_s13 + $0x20] sm:$0xff] }
 0x352   : > { %v1154_v45 = vmax.f32 %v1103_v34, 0.0  ;;  %v1144_v46 = vadd.f32 %v1143_v44, %v1044_v63  ;;  %v1145_v47 = vpop.f32.mrb[6].mxu1 }
 0x353   : > { %v1155_v48 = vmax.f32 %v1105_v39, 0.0  ;;  %v1146_v49 = vadd.f32 %v1145_v47, %v1049_v30  ;;  %v1147_v50 = vpop.f32.mrb[7].mxu1  ;;  %v1152_v55 = vmax.f32 %v1142_v43, 0.0 }
 0x354   : > { %v1166_v51 = vpack.c.bf16 %v1154_v45, %v1150_v33  ;;  %v1148_v52 = vadd.f32 %v1147_v50, %v1049_v30  ;;  %v1153_v56 = vmax.f32 %v1144_v46, 0.0  ;;  %v1393_v45 = vld [vmem:[%s2055_s13 + $0x28] sm:$0xff]  ;;  %v1188_v46 = vpop.permute.xlu0 %1187  ;;  %v1394_v50 = vld [vmem:[%s2055_s13 + $0x30] sm:$0xff] }
 0x355   : > { %v1167_v53 = vpack.c.bf16 %v1155_v48, %v1151_v37  ;;  %v1156_v54 = vmax.f32 %v1146_v49, 0.0 }
 0x356   : > { %v1157_v59 = vmax.f32 %v1148_v52, 0.0 }
 0x357   : > { %v1168_v57 = vpack.c.bf16 %v1156_v54, %v1152_v55  ;;  %1242 = vmatprep.subr.bf16.mxu0 %v1167_v53  ;;  %v1395_v54 = vld [vmem:[%s2055_s13 + $0x38] sm:$0xff] }
 0x358   : > { %v1169_v61 = vpack.c.bf16 %v1157_v59, %v1153_v56  ;;  %1243 = vmatpush1.bf16.msra.mxu0 %v1166_v51  ;;  %v1657_v59 = vld [vmem:[%s2055_s13 + $0xa0] sm:$0xff] }
 0x35a   : > { %1315 = vmatprep.subr.bf16.mxu1 %v1169_v61 }
 0x35b   : > { %1645 = vmatmul.mubr.msk.bf16.vlgmr.msra.gmra.mrb[8].mxu0 %vm1060_vm13, %v1778_v60  ;;  %1316 = vmatpush1.bf16.msra.mxu1 %v1168_v57 }
 0x35c   : > { %1284 = vmatprep.mubr.bf16.mxu0 %v1883_v0 }
 0x35e   : > { %1649 = vmatmul.mubr.msk.bf16.vlgmr.msra.gmra.mrb[8].mxu1 %vm1060_vm13, %v1778_v60 }
 0x35f   : > { %1357 = vmatprep.mubr.bf16.mxu1 %v1883_v0 }
 0x363   : > { %1646 = vmatmul.mubr.msk.bf16.gmra.mrb[12].mxu0 %vm1060_vm13, %v1779_v58 }
 0x364   : > { %1294 = vmatprep.mubr.bf16.mxu0 %v1883_v0 }
 0x366   : > { %1650 = vmatmul.mubr.msk.bf16.gmra.mrb[12].mxu1 %vm1060_vm13, %v1779_v58 }
 0x367   : > { %1367 = vmatprep.mubr.bf16.mxu1 %v1883_v0 }
 0x36b   : > { %1647 = vmatmul.mubr.msk.bf16.gmra.mrb[16].mxu0 %vm1060_vm13, %v1780_v62 }
 0x36c   : > { %1304 = vmatprep.mubr.bf16.mxu0 %v1883_v0 }
 0x36e   : > { %1651 = vmatmul.mubr.msk.bf16.gmra.mrb[16].mxu1 %vm1060_vm13, %v1780_v62  ;;  %v1658_v62 = vld [vmem:[%s2055_s13 + $0xa8] sm:$0xff] }
 0x36f   : > { %1377 = vmatprep.mubr.bf16.mxu1 %v1883_v0 }
 0x373   : > { %1648 = vmatmul.mubr.msk.bf16.gmra.mrb[20].mxu0 %vm1060_vm13, %v1781_v2 }
 0x376   : > { %1652 = vmatmul.mubr.msk.bf16.gmra.mrb[20].mxu1 %vm1060_vm13, %v1781_v2 }
 0x42e   : > { %v1276_v4 = vpop.f32.mrb[8].mxu0 }
 0x42f   : > { %v1277_v7 = vadd.f32 %v1276_v4, %v1173_v3  ;;  %v1278_v8 = vpop.f32.mrb[9].mxu0 }
 0x430   : > { %v1279_v41 = vadd.f32 %v1278_v8, %v1173_v3  ;;  %v1280_v10 = vpop.f32.mrb[10].mxu0 }
 0x431   : > { %v1404_v1 = vadd.f32 %v1388_v5, %v1277_v7  ;;  %v1281_v0 = vadd.f32 %v1280_v10, %v1178_v9  ;;  %v1282_v42 = vpop.f32.mrb[11].mxu0  ;;  %v1349_v13 = vpop.f32.mrb[8].mxu1  ;;  %v1659_v7 = vld [vmem:[%s2055_s13 + $0xb0] sm:$0xff] }
 0x432   : > { %v1405_v40 = vadd.f32 %v1389_v6, %v1279_v41  ;;  %v1283_v16 = vadd.f32 %v1282_v42, %v1178_v9  ;;  %v1350_v18 = vadd.f32 %v1349_v13, %v1173_v3  ;;  %v1351_v14 = vpop.f32.mrb[9].mxu1 }
 0x433   : > { %v1420_v20 = vmax.f32 %v1404_v1, 0.0  ;;  %v1406_v21 = vadd.f32 %v1390_v38, %v1281_v0  ;;  %v1352_v22 = vadd.f32 %v1351_v14, %v1173_v3  ;;  %v1353_v23 = vpop.f32.mrb[10].mxu1  ;;  %v1660_v38 = vld [vmem:[%s2055_s13 + $0xb8] sm:$0xff] }
 0x434   : > { %v1421_v25 = vmax.f32 %v1405_v40, 0.0  ;;  %v1407_v12 = vadd.f32 %v1391_v11, %v1283_v16  ;;  %v1468_v17 = vadd.f32 %v1653_v15, %v1350_v18  ;;  %v1354_v26 = vadd.f32 %v1353_v23, %v1178_v9  ;;  %v1355_v63 = vpop.f32.mrb[11].mxu1  ;;  %v1193_v11 = vpop.permute.xlu1 %1192  ;;  %v1396_v18 = vld [vmem:[%s2055_s13 + $0x40] sm:$0xff] }
 0x435   : > { %1436 = vst [vmem:[%s2454_s12] sm:$0xff] %v1420_v20  ;;  %v1422_v28 = vmax.f32 %v1406_v21, 0.0  ;;  %v1469_v29 = vadd.f32 %v1654_v19, %v1352_v22  ;;  %v1356_v30 = vadd.f32 %v1355_v63, %v1178_v9  ;;  %v1397_v22 = vld [vmem:[%s2055_s13 + $0x48] sm:$0xff]  ;;  %v1198_v23 = vpop.permute.xlu0 %1197 }
 0x436   : > { %1437 = vst [vmem:[%s2454_s12 + $0x8] sm:$0xff] %v1421_v25  ;;  %v1423_v32 = vmax.f32 %v1407_v12, 0.0  ;;  %v1484_v33 = vmax.f32 %v1468_v17, 0.0  ;;  %v1470_v34 = vadd.f32 %v1655_v24, %v1354_v26  ;;  %v1286_v35 = vpop.f32.mrb[12].mxu0  ;;  %v1398_v17 = vld [vmem:[%s2055_s13 + $0x50] sm:$0xff] }
 0x437   : > { %1438 = vst [vmem:[%s2454_s12 + $0x10] sm:$0xff] %v1422_v28  ;;  %v1485_v37 = vmax.f32 %v1469_v29, 0.0  ;;  %v1471_v39 = vadd.f32 %v1656_v27, %v1356_v30  ;;  %v1287_v43 = vadd.f32 %v1286_v35, %v1183_v31  ;;  %v1288_v44 = vpop.f32.mrb[13].mxu0  ;;  %v1399_v29 = vld [vmem:[%s2055_s13 + $0x58] sm:$0xff] }
 0x438   : > { %1439 = vst [vmem:[%s2454_s12 + $0x18] sm:$0xff] %v1423_v32  ;;  %1669 = vst [vmem:[%s2454_s12 + $0x80] sm:$0xff] %v1484_v33  ;;  %v1486_v47 = vmax.f32 %v1470_v34, 0.0  ;;  %v1289_v48 = vadd.f32 %v1288_v44, %v1183_v31  ;;  %v1290_v49 = vpop.f32.mrb[14].mxu0 }
 0x439   : > { %1670 = vst [vmem:[%s2454_s12 + $0x88] sm:$0xff] %v1485_v37  ;;  %v1487_v51 = vmax.f32 %v1471_v39, 0.0  ;;  %v1408_v52 = vadd.f32 %v1392_v36, %v1287_v43  ;;  %v1291_v53 = vadd.f32 %v1290_v49, %v1188_v46  ;;  %v1292_v55 = vpop.f32.mrb[15].mxu0  ;;  %v1359_v56 = vpop.f32.mrb[12].mxu1  ;;  %v1662_v36 = vld [vmem:[%s2055_s13 + $0xc8] sm:$0xff] }
 0x43a   : > { %1671 = vst [vmem:[%s2454_s12 + $0x90] sm:$0xff] %v1486_v47  ;;  %v1409_v57 = vadd.f32 %v1393_v45, %v1289_v48  ;;  %v1293_v60 = vadd.f32 %v1292_v55, %v1188_v46  ;;  %v1360_v61 = vadd.f32 %v1359_v56, %v1183_v31  ;;  %v1361_v58 = vpop.f32.mrb[13].mxu1  ;;  %v1663_v45 = vld [vmem:[%s2055_s13 + $0xd0] sm:$0xff] }
 0x43b   : > { %1672 = vst [vmem:[%s2454_s12 + $0x98] sm:$0xff] %v1487_v51  ;;  %v1424_v2 = vmax.f32 %v1408_v52, 0.0  ;;  %v1410_v3 = vadd.f32 %v1394_v50, %v1291_v53  ;;  %v1362_v4 = vadd.f32 %v1361_v58, %v1183_v31  ;;  %v1363_v5 = vpop.f32.mrb[14].mxu1  ;;  %v1661_v31 = vld [vmem:[%s2055_s13 + $0xc0] sm:$0xff]  ;;  %v1664_v51 = vld [vmem:[%s2055_s13 + $0xd8] sm:$0xff] }
 0x43c   : > { %v1425_v8 = vmax.f32 %v1409_v57, 0.0  ;;  %v1411_v6 = vadd.f32 %v1395_v54, %v1293_v60  ;;  %v1472_v9 = vadd.f32 %v1657_v59, %v1360_v61  ;;  %v1364_v41 = vadd.f32 %v1363_v5, %v1188_v46  ;;  %v1365_v10 = vpop.f32.mrb[15].mxu1  ;;  %v1203_v54 = vpop.permute.xlu1 %1202  ;;  %v1400_v61 = vld [vmem:[%s2055_s13 + $0x60] sm:$0xff] }
 0x43d   : > { %1440 = vst [vmem:[%s2454_s12 + $0x20] sm:$0xff] %v1424_v2  ;;  %v1426_v1 = vmax.f32 %v1410_v3, 0.0  ;;  %v1473_v0 = vadd.f32 %v1658_v62, %v1362_v4  ;;  %v1366_v42 = vadd.f32 %v1365_v10, %v1188_v46  ;;  %v1401_v4 = vld [vmem:[%s2055_s13 + $0x68] sm:$0xff]  ;;  %v1208_v5 = vpop.permute.xlu0 %1207 }
 0x43e   : > { %1441 = vst [vmem:[%s2454_s12 + $0x28] sm:$0xff] %v1425_v8  ;;  %v1427_v13 = vmax.f32 %v1411_v6, 0.0  ;;  %v1488_v15 = vmax.f32 %v1472_v9, 0.0  ;;  %v1474_v40 = vadd.f32 %v1659_v7, %v1364_v41  ;;  %v1296_v16 = vpop.f32.mrb[16].mxu0  ;;  %v1402_v9 = vld [vmem:[%s2055_s13 + $0x70] sm:$0xff] }
 0x43f   : > { %1442 = vst [vmem:[%s2454_s12 + $0x30] sm:$0xff] %v1426_v1  ;;  %v1489_v14 = vmax.f32 %v1473_v0, 0.0  ;;  %v1475_v19 = vadd.f32 %v1660_v38, %v1366_v42  ;;  %v1297_v20 = vadd.f32 %v1296_v16, %v1193_v11  ;;  %v1298_v21 = vpop.f32.mrb[17].mxu0  ;;  %v1403_v0 = vld [vmem:[%s2055_s13 + $0x78] sm:$0xff] }
 0x440   : > { %1443 = vst [vmem:[%s2454_s12 + $0x38] sm:$0xff] %v1427_v13  ;;  %1673 = vst [vmem:[%s2454_s12 + $0xa0] sm:$0xff] %v1488_v15  ;;  %v1490_v24 = vmax.f32 %v1474_v40, 0.0  ;;  %v1299_v25 = vadd.f32 %v1298_v21, %v1193_v11  ;;  %v1300_v12 = vpop.f32.mrb[18].mxu0 }
 0x441   : > { %1674 = vst [vmem:[%s2454_s12 + $0xa8] sm:$0xff] %v1489_v14  ;;  %v1491_v26 = vmax.f32 %v1475_v19, 0.0  ;;  %v1412_v63 = vadd.f32 %v1396_v18, %v1297_v20  ;;  %v1301_v27 = vadd.f32 %v1300_v12, %v1198_v23  ;;  %v1302_v28 = vpop.f32.mrb[19].mxu0  ;;  %v1369_v30 = vpop.f32.mrb[16].mxu1  ;;  %v1666_v18 = vld [vmem:[%s2055_s13 + $0xe8] sm:$0xff] }
 0x442   : > { %1675 = vst [vmem:[%s2454_s12 + $0xb0] sm:$0xff] %v1490_v24  ;;  %v1413_v32 = vadd.f32 %v1397_v22, %v1299_v25  ;;  %v1303_v33 = vadd.f32 %v1302_v28, %v1198_v23  ;;  %v1370_v34 = vadd.f32 %v1369_v30, %v1193_v11  ;;  %v1371_v35 = vpop.f32.mrb[17].mxu1  ;;  %v1667_v22 = vld [vmem:[%s2055_s13 + $0xf0] sm:$0xff] }
 0x443   : > { %1676 = vst [vmem:[%s2454_s12 + $0xb8] sm:$0xff] %v1491_v26  ;;  %v1428_v37 = vmax.f32 %v1412_v63, 0.0  ;;  %v1414_v39 = vadd.f32 %v1398_v17, %v1301_v27  ;;  %v1372_v43 = vadd.f32 %v1371_v35, %v1193_v11  ;;  %v1373_v44 = vpop.f32.mrb[18].mxu1  ;;  %v1665_v11 = vld [vmem:[%s2055_s13 + $0xe0] sm:$0xff]  ;;  %v1668_v26 = vld [vmem:[%s2055_s13 + $0xf8] sm:$0xff] }
 0x444   : > { %v1429_v46 = vmax.f32 %v1413_v32, 0.0  ;;  %v1415_v47 = vadd.f32 %v1399_v29, %v1303_v33  ;;  %v1476_v48 = vadd.f32 %v1661_v31, %v1370_v34  ;;  %v1374_v49 = vadd.f32 %v1373_v44, %v1198_v23  ;;  %v1375_v50 = vpop.f32.mrb[19].mxu1 }
 0x445   : > { %1444 = vst [vmem:[%s2454_s12 + $0x40] sm:$0xff] %v1428_v37  ;;  %v1430_v52 = vmax.f32 %v1414_v39, 0.0  ;;  %v1477_v53 = vadd.f32 %v1662_v36, %v1372_v43  ;;  %v1376_v55 = vadd.f32 %v1375_v50, %v1198_v23 }
 0x446   : > { %1445 = vst [vmem:[%s2454_s12 + $0x48] sm:$0xff] %v1429_v46  ;;  %v1431_v56 = vmax.f32 %v1415_v47, 0.0  ;;  %v1492_v59 = vmax.f32 %v1476_v48, 0.0  ;;  %v1478_v57 = vadd.f32 %v1663_v45, %v1374_v49  ;;  %v1306_v60 = vpop.f32.mrb[20].mxu0 }
 0x447   : > { %1446 = vst [vmem:[%s2454_s12 + $0x50] sm:$0xff] %v1430_v52  ;;  %v1493_v58 = vmax.f32 %v1477_v53, 0.0  ;;  %v1479_v62 = vadd.f32 %v1664_v51, %v1376_v55  ;;  %v1307_v2 = vadd.f32 %v1306_v60, %v1203_v54  ;;  %v1308_v3 = vpop.f32.mrb[21].mxu0 }
 0x448   : > { %1447 = vst [vmem:[%s2454_s12 + $0x58] sm:$0xff] %v1431_v56  ;;  %1677 = vst [vmem:[%s2454_s12 + $0xc0] sm:$0xff] %v1492_v59  ;;  %v1494_v7 = vmax.f32 %v1478_v57, 0.0  ;;  %v1309_v8 = vadd.f32 %v1308_v3, %v1203_v54  ;;  %v1310_v6 = vpop.f32.mrb[22].mxu0 }
 0x449   : > { %1678 = vst [vmem:[%s2454_s12 + $0xc8] sm:$0xff] %v1493_v58  ;;  %v1495_v41 = vmax.f32 %v1479_v62, 0.0  ;;  %v1416_v10 = vadd.f32 %v1400_v61, %v1307_v2  ;;  %v1311_v38 = vadd.f32 %v1310_v6, %v1208_v5  ;;  %v1312_v1 = vpop.f32.mrb[23].mxu0  ;;  %v1379_v42 = vpop.f32.mrb[20].mxu1 }
 0x44a   : > { %1679 = vst [vmem:[%s2454_s12 + $0xd0] sm:$0xff] %v1494_v7  ;;  %v1417_v13 = vadd.f32 %v1401_v4, %v1309_v8  ;;  %v1313_v15 = vadd.f32 %v1312_v1, %v1208_v5  ;;  %v1380_v40 = vadd.f32 %v1379_v42, %v1203_v54  ;;  %v1381_v16 = vpop.f32.mrb[21].mxu1 }
 0x44b   : > { %1680 = vst [vmem:[%s2454_s12 + $0xd8] sm:$0xff] %v1495_v41  ;;  %v1432_v14 = vmax.f32 %v1416_v10, 0.0  ;;  %v1418_v19 = vadd.f32 %v1402_v9, %v1311_v38  ;;  %v1382_v20 = vadd.f32 %v1381_v16, %v1203_v54  ;;  %v1383_v21 = vpop.f32.mrb[22].mxu1 }
 0x44c   : > { %v1433_v23 = vmax.f32 %v1417_v13, 0.0  ;;  %v1419_v24 = vadd.f32 %v1403_v0, %v1313_v15  ;;  %v1480_v25 = vadd.f32 %v1665_v11, %v1380_v40  ;;  %v1384_v12 = vadd.f32 %v1383_v21, %v1208_v5  ;;  %v1385_v17 = vpop.f32.mrb[23].mxu1 }
 0x44d   : > { %1448 = vst [vmem:[%s2454_s12 + $0x60] sm:$0xff] %v1432_v14  ;;  %v1434_v63 = vmax.f32 %v1418_v19, 0.0  ;;  %v1481_v27 = vadd.f32 %v1666_v18, %v1382_v20  ;;  %v1386_v28 = vadd.f32 %v1385_v17, %v1208_v5 }
 0x44e   : > { %1449 = vst [vmem:[%s2454_s12 + $0x68] sm:$0xff] %v1433_v23  ;;  %v1435_v29 = vmax.f32 %v1419_v24, 0.0  ;;  %v1496_v30 = vmax.f32 %v1480_v25, 0.0  ;;  %v1482_v31 = vadd.f32 %v1667_v22, %v1384_v12 }
 0x44f   : > { %1450 = vst [vmem:[%s2454_s12 + $0x70] sm:$0xff] %v1434_v63  ;;  %v1497_v32 = vmax.f32 %v1481_v27, 0.0  ;;  %v1483_v33 = vadd.f32 %v1668_v26, %v1386_v28 }
 0x450   : > { %1451 = vst [vmem:[%s2454_s12 + $0x78] sm:$0xff] %v1435_v29  ;;  %1681 = vst [vmem:[%s2454_s12 + $0xe0] sm:$0xff] %v1496_v30  ;;  %v1498_v34 = vmax.f32 %v1482_v31, 0.0 }
 0x451   : > { %1682 = vst [vmem:[%s2454_s12 + $0xe8] sm:$0xff] %v1497_v32  ;;  %v1499_v35 = vmax.f32 %v1483_v33, 0.0 }
 0x452   : > { %1683 = vst [vmem:[%s2454_s12 + $0xf0] sm:$0xff] %v1498_v34 }
 0x453   : > { %1684 = vst [vmem:[%s2454_s12 + $0xf8] sm:$0xff] %v1499_v35 }
 0x454   : > { %1825 = shalt.err (!%p1822_p2)
}
 0x455   : > { %s1826_s18 = scalar_lea.hbm %s2514_s26, 4096  ;;  %s1830_s14 = scalar_lea.hbm %s2569_s6, 8192 }
 0x456   : > { %p1827_p4 = scmp.ne.s32.totalorder %s2514_s26, %s1826_s18  ;;  %p1831_p9 = scmp.lt.u32.totalorder %s2514_s26, %s2569_s6 }
 0x457   : > { %p1832_p1 = scmp.lt.u32.totalorder %s1830_s14, %s1826_s18  ;;  %p1834_p6 = scmp.lt.u32.totalorder %s1826_s18, %s2514_s26 }
 0x458   : > { %p1828_p5 = pnand %p1827_p4, %p2576_p11 }
 0x459   : > { %p1833_p3 = por %p1832_p1, %p1831_p9 }
 0x45a   : > { %p1829_p7 = pneg %p1828_p5 }
 0x45b   : > { %p1835_p12 = por %p1834_p6, %p1833_p3 }
 0x45d   : > { %p1836_p13 = pnand %p1835_p12, %p1829_p7 }
 0x45f   : > { %1839 = shalt.err (!%p1836_p13)
}
 0x460   : > { %s1908_s13 = smov 256   ;;  %s1909_s17 = smov 16  }
 0x461   : > { %1697 = dma.vmem_to_hbm [thread:$0]  (%p2576_p11), %s2516_s15, 4096, %s2514_s26, %s1518_s25, %s1908_s13, %s1908_s13, %s1909_s17  }
 0x462 PF: > { %s1547_s28 = sand.u32 1, %s1866_s21   ;;  %p2577_p8 = scmp.ne.s32.totalorder %s2574_s10, 0 }
 0x463   : > { %p2578_p10 = scmp.ge.s32.totalorder %s1878_s24, 2  ;;  %s1548_s8 = scalar_lea.sflag [#allocation6], %s1547_s28 }
 0x465   : > { %p1704_p0 = pnand %p2578_p10, %p2577_p8 }
 0x467   : > { %1861 = dma.done.wait (!%p1704_p0), %s1548_s8, 4096  }
 0x468   : > { %1863 = vsyncadd (!%p1704_p0), %s1548_s8, 4294963200  ;;  %p19_p2 = scmp.ge.s32.totalorder %s1970_s27, 4   ;;  %s2579_s21 = smov %s1870_s22 }
 0x469   : > { %s2580_s22 = smov %s1874_s23  ;;  %s2581_s23 = smov %s1982_s30 }
 0x46a   : > { %s2582_s24 = smov %s1970_s27  ;;  %21 = sbr.rel (!%p19_p2) target bundleno = 5 (0x5), region = 91 }
 0x471   :  { %1553 = vsyncpa [#allocation5], 1 }
 0x472   :  { %1555 = vsyncpa [#allocation5 + $0x1], 1 }
 0x473   :  { %1556 = vsyncpa [#allocation6], 1 }
 0x474   :  { %1558 = vsyncpa [#allocation6 + $0x1], 1 }

</bundles_post_ra>
